<compile_context>
chip_gen: v7x
topology: tpu7x:2x2x1
jax: 0.10.0
libtpu: 0.0.40
codegen_flags: <defaults>
</compile_context>

<pallas_src>
import functools

import jax
import jax.numpy as jnp
import numpy as np
from jax.experimental import pallas as pl
from jax.experimental.pallas import tpu as pltpu

NUM_ROUTING_ITERATIONS = 3


def _capsule_routing_kernel(x_ref, w_ref, o_ref, *, num_iterations):
    # x_ref: (I, B, R)     -- x[b, r, i] pre-transposed so x_ref[i] is a clean (B, R) slab
    # w_ref: (I, C, O, R)  -- route_weights[c, r, i, o] pre-transposed, R on lanes
    # o_ref: (C, B, O)
    num_in, B, R = x_ref.shape
    _, C, O, _ = w_ref.shape

    # priors[c, b, o, r] = sum_i x[b, r, i] * w[c, r, i, o]
    # I is tiny (8): unrolled VPU multiply-accumulate, accumulated directly in
    # the routing layout (C, B, O, R); no 4-D broadcast blow-up.
    priors = jnp.zeros((C, B, O, R), dtype=jnp.float32)
    for i in range(num_in):
        x_i = x_ref[i].astype(jnp.float32)          # (B, R)
        w_i = w_ref[i].astype(jnp.float32)          # (C, O, R)
        priors = priors + w_i[:, None, :, :] * x_i[None, :, None, :]

    # In torch, logits are (C, B, R, 1, O) but start at zero and are only ever
    # updated with a (..., 1)-broadcast delta, so they are identical across O.
    # Keeping them as (C, B, 1, R) is numerically exact.
    logits = jnp.zeros((C, B, 1, R), dtype=jnp.float32)
    inv_r = jnp.float32(1.0 / R)
    v = jnp.zeros((C, B, O, 1), dtype=jnp.float32)

    for it in range(num_iterations):
        if it == 0:
            # logits are exactly zero -> softmax over R is exactly uniform.
            probs = jnp.full((C, B, 1, R), inv_r, dtype=jnp.float32)
        else:
            # softmax over the route-node axis (R = lane axis -> XLU reductions)
            m = jnp.max(logits, axis=-1, keepdims=True)
            e = jnp.exp(logits - m)
            probs = e / jnp.sum(e, axis=-1, keepdims=True)          # (C, B, 1, R)

        s = jnp.sum(probs * priors, axis=-1, keepdims=True)         # (C, B, O, 1)

        # squash along the out_channels axis (short sublane reduction over O)
        sq = jnp.sum(s * s, axis=2, keepdims=True)                  # (C, B, 1, 1)
        scale = jnp.sqrt(sq) / (1.0 + sq)                           # == (sq/(1+sq))/sqrt(sq)
        v = s * scale                                               # (C, B, O, 1)

        if it != num_iterations - 1:
            delta = jnp.sum(priors * v, axis=2, keepdims=True)      # (C, B, 1, R)
            logits = logits + delta

    o_ref[...] = v[:, :, :, 0].astype(o_ref.dtype)                  # (C, B, O)


def capsule_layer_forward(x, route_weights, num_iterations=NUM_ROUTING_ITERATIONS):
    """x: (B, R, I) float32; route_weights: (C, R, I, O) float32.

    Returns (C, B, 1, 1, O), matching the PyTorch module's routing output.
    """
    B, R, I = x.shape
    C, Rw, Iw, O = route_weights.shape
    assert (R, I) == (Rw, Iw)

    # Layout plumbing outside the kernel (cheap XLA transposes):
    #   x_t[i, b, r]    = x[b, r, i]
    #   w_t[i, c, o, r] = route_weights[c, r, i, o]
    x_t = jnp.transpose(x, (2, 0, 1))
    w_t = jnp.transpose(route_weights, (2, 0, 3, 1))

    kernel = functools.partial(_capsule_routing_kernel,
                               num_iterations=num_iterations)

    out = pl.pallas_call(
        kernel,
        out_shape=jax.ShapeDtypeStruct((C, B, O), jnp.float32),
        # Single invocation, whole arrays resident in VMEM (<< 1 MiB total).
        in_specs=[
            pl.BlockSpec(memory_space=pltpu.MemorySpace.VMEM),
            pl.BlockSpec(memory_space=pltpu.MemorySpace.VMEM),
        ],
        out_specs=pl.BlockSpec(memory_space=pltpu.MemorySpace.VMEM),
    )(x_t, w_t)

    return out.reshape(C, B, 1, 1, O)


def _reference_forward(x, route_weights, num_iterations=NUM_ROUTING_ITERATIONS):
    """Pure-JAX transcription of the PyTorch forward (routing branch)."""
    priors = jnp.einsum('bri,crio->cbro', x, route_weights)[:, :, :, None, :]
    logits = jnp.zeros_like(priors)
    outputs = None
    for i in range(num_iterations):
        probs = jax.nn.softmax(logits, axis=2)
        s = jnp.sum(probs * priors, axis=2, keepdims=True)
        sq = jnp.sum(s * s, axis=-1, keepdims=True)
        outputs = (sq / (1.0 + sq)) * s / jnp.sqrt(sq)
        if i != num_iterations - 1:
            logits = logits + jnp.sum(priors * outputs, axis=-1, keepdims=True)
    return outputs  # (C, B, 1, 1, O)


if __name__ == "__main__":
    # Small shapes consistent with the routing configuration of CapsuleLayer:
    # num_capsules=4, num_route_nodes=64, in_channels=8, out_channels=16, batch=2
    C, R, I, O, B = 4, 64, 8, 16, 2

    key = jax.random.PRNGKey(0)
    k_w, k_x = jax.random.split(key)
    # nn.Parameter(torch.randn(...)) -> standard normal init, deterministic here.
    route_weights = jax.random.normal(k_w, (C, R, I, O), dtype=jnp.float32)
    x = jax.random.normal(k_x, (B, R, I), dtype=jnp.float32)

    out = jax.block_until_ready(capsule_layer_forward(x, route_weights))

    ref = jax.block_until_ready(_reference_forward(x, route_weights))
    np.testing.assert_allclose(np.asarray(out), np.asarray(ref),
                               rtol=1e-5, atol=1e-5)
    assert out.shape == (C, B, 1, 1, O)

    print("KERNEL_OK")
</pallas_src>

<mosaic_0001>
module attributes {stable_mosaic.version = 11 : i64} {
  func.func @_capsule_routing_kernel(%arg0: memref<8x2x64xf32, #tpu.memory_space<vmem>>, %arg1: memref<8x4x16x64xf32, #tpu.memory_space<vmem>>, %arg2: memref<4x2x16xf32, #tpu.memory_space<vmem>>) attributes {dimension_semantics = [], scalar_prefetch = 0 : i64, scratch_operands = 0 : i64, tpu.core_type = #tpu.core_type<tc>} {
    %cst = arith.constant 0.000000e+00 : f32
    %0 = vector.broadcast %cst : f32 to vector<4x2x16x64xf32>
    %c0 = arith.constant 0 : index
    %c0_0 = arith.constant 0 : index
    %c0_1 = arith.constant 0 : index
    %1 = vector.load %arg0[%c0, %c0_0, %c0_1] : memref<8x2x64xf32, #tpu.memory_space<vmem>>, vector<1x2x64xf32>
    %2 = vector.shape_cast %1 : vector<1x2x64xf32> to vector<2x64xf32>
    %c0_2 = arith.constant 0 : index
    %c0_3 = arith.constant 0 : index
    %c0_4 = arith.constant 0 : index
    %c0_5 = arith.constant 0 : index
    %3 = vector.load %arg1[%c0_2, %c0_3, %c0_4, %c0_5] : memref<8x4x16x64xf32, #tpu.memory_space<vmem>>, vector<1x4x16x64xf32>
    %4 = vector.shape_cast %3 : vector<1x4x16x64xf32> to vector<4x16x64xf32>
    %5 = vector.shape_cast %4 : vector<4x16x64xf32> to vector<4x1x16x64xf32>
    %6 = vector.shape_cast %2 : vector<2x64xf32> to vector<1x2x1x64xf32>
    %7 = vector.broadcast %5 : vector<4x1x16x64xf32> to vector<4x2x16x64xf32>
    %8 = vector.broadcast %6 : vector<1x2x1x64xf32> to vector<4x2x16x64xf32>
    %9 = arith.mulf %7, %8 : vector<4x2x16x64xf32>
    %10 = arith.addf %0, %9 : vector<4x2x16x64xf32>
    %c1 = arith.constant 1 : index
    %c0_6 = arith.constant 0 : index
    %c0_7 = arith.constant 0 : index
    %11 = vector.load %arg0[%c1, %c0_6, %c0_7] : memref<8x2x64xf32, #tpu.memory_space<vmem>>, vector<1x2x64xf32>
    %12 = vector.shape_cast %11 : vector<1x2x64xf32> to vector<2x64xf32>
    %c1_8 = arith.constant 1 : index
    %c0_9 = arith.constant 0 : index
    %c0_10 = arith.constant 0 : index
    %c0_11 = arith.constant 0 : index
    %13 = vector.load %arg1[%c1_8, %c0_9, %c0_10, %c0_11] : memref<8x4x16x64xf32, #tpu.memory_space<vmem>>, vector<1x4x16x64xf32>
    %14 = vector.shape_cast %13 : vector<1x4x16x64xf32> to vector<4x16x64xf32>
    %15 = vector.shape_cast %14 : vector<4x16x64xf32> to vector<4x1x16x64xf32>
    %16 = vector.shape_cast %12 : vector<2x64xf32> to vector<1x2x1x64xf32>
    %17 = vector.broadcast %15 : vector<4x1x16x64xf32> to vector<4x2x16x64xf32>
    %18 = vector.broadcast %16 : vector<1x2x1x64xf32> to vector<4x2x16x64xf32>
    %19 = arith.mulf %17, %18 : vector<4x2x16x64xf32>
    %20 = arith.addf %10, %19 : vector<4x2x16x64xf32>
    %c2 = arith.constant 2 : index
    %c0_12 = arith.constant 0 : index
    %c0_13 = arith.constant 0 : index
    %21 = vector.load %arg0[%c2, %c0_12, %c0_13] : memref<8x2x64xf32, #tpu.memory_space<vmem>>, vector<1x2x64xf32>
    %22 = vector.shape_cast %21 : vector<1x2x64xf32> to vector<2x64xf32>
    %c2_14 = arith.constant 2 : index
    %c0_15 = arith.constant 0 : index
    %c0_16 = arith.constant 0 : index
    %c0_17 = arith.constant 0 : index
    %23 = vector.load %arg1[%c2_14, %c0_15, %c0_16, %c0_17] : memref<8x4x16x64xf32, #tpu.memory_space<vmem>>, vector<1x4x16x64xf32>
    %24 = vector.shape_cast %23 : vector<1x4x16x64xf32> to vector<4x16x64xf32>
    %25 = vector.shape_cast %24 : vector<4x16x64xf32> to vector<4x1x16x64xf32>
    %26 = vector.shape_cast %22 : vector<2x64xf32> to vector<1x2x1x64xf32>
    %27 = vector.broadcast %25 : vector<4x1x16x64xf32> to vector<4x2x16x64xf32>
    %28 = vector.broadcast %26 : vector<1x2x1x64xf32> to vector<4x2x16x64xf32>
    %29 = arith.mulf %27, %28 : vector<4x2x16x64xf32>
    %30 = arith.addf %20, %29 : vector<4x2x16x64xf32>
    %c3 = arith.constant 3 : index
    %c0_18 = arith.constant 0 : index
    %c0_19 = arith.constant 0 : index
    %31 = vector.load %arg0[%c3, %c0_18, %c0_19] : memref<8x2x64xf32, #tpu.memory_space<vmem>>, vector<1x2x64xf32>
    %32 = vector.shape_cast %31 : vector<1x2x64xf32> to vector<2x64xf32>
    %c3_20 = arith.constant 3 : index
    %c0_21 = arith.constant 0 : index
    %c0_22 = arith.constant 0 : index
    %c0_23 = arith.constant 0 : index
    %33 = vector.load %arg1[%c3_20, %c0_21, %c0_22, %c0_23] : memref<8x4x16x64xf32, #tpu.memory_space<vmem>>, vector<1x4x16x64xf32>
    %34 = vector.shape_cast %33 : vector<1x4x16x64xf32> to vector<4x16x64xf32>
    %35 = vector.shape_cast %34 : vector<4x16x64xf32> to vector<4x1x16x64xf32>
    %36 = vector.shape_cast %32 : vector<2x64xf32> to vector<1x2x1x64xf32>
    %37 = vector.broadcast %35 : vector<4x1x16x64xf32> to vector<4x2x16x64xf32>
    %38 = vector.broadcast %36 : vector<1x2x1x64xf32> to vector<4x2x16x64xf32>
    %39 = arith.mulf %37, %38 : vector<4x2x16x64xf32>
    %40 = arith.addf %30, %39 : vector<4x2x16x64xf32>
    %c4 = arith.constant 4 : index
    %c0_24 = arith.constant 0 : index
    %c0_25 = arith.constant 0 : index
    %41 = vector.load %arg0[%c4, %c0_24, %c0_25] : memref<8x2x64xf32, #tpu.memory_space<vmem>>, vector<1x2x64xf32>
    %42 = vector.shape_cast %41 : vector<1x2x64xf32> to vector<2x64xf32>
    %c4_26 = arith.constant 4 : index
    %c0_27 = arith.constant 0 : index
    %c0_28 = arith.constant 0 : index
    %c0_29 = arith.constant 0 : index
    %43 = vector.load %arg1[%c4_26, %c0_27, %c0_28, %c0_29] : memref<8x4x16x64xf32, #tpu.memory_space<vmem>>, vector<1x4x16x64xf32>
    %44 = vector.shape_cast %43 : vector<1x4x16x64xf32> to vector<4x16x64xf32>
    %45 = vector.shape_cast %44 : vector<4x16x64xf32> to vector<4x1x16x64xf32>
    %46 = vector.shape_cast %42 : vector<2x64xf32> to vector<1x2x1x64xf32>
    %47 = vector.broadcast %45 : vector<4x1x16x64xf32> to vector<4x2x16x64xf32>
    %48 = vector.broadcast %46 : vector<1x2x1x64xf32> to vector<4x2x16x64xf32>
    %49 = arith.mulf %47, %48 : vector<4x2x16x64xf32>
    %50 = arith.addf %40, %49 : vector<4x2x16x64xf32>
    %c5 = arith.constant 5 : index
    %c0_30 = arith.constant 0 : index
    %c0_31 = arith.constant 0 : index
    %51 = vector.load %arg0[%c5, %c0_30, %c0_31] : memref<8x2x64xf32, #tpu.memory_space<vmem>>, vector<1x2x64xf32>
    %52 = vector.shape_cast %51 : vector<1x2x64xf32> to vector<2x64xf32>
    %c5_32 = arith.constant 5 : index
    %c0_33 = arith.constant 0 : index
    %c0_34 = arith.constant 0 : index
    %c0_35 = arith.constant 0 : index
    %53 = vector.load %arg1[%c5_32, %c0_33, %c0_34, %c0_35] : memref<8x4x16x64xf32, #tpu.memory_space<vmem>>, vector<1x4x16x64xf32>
    %54 = vector.shape_cast %53 : vector<1x4x16x64xf32> to vector<4x16x64xf32>
    %55 = vector.shape_cast %54 : vector<4x16x64xf32> to vector<4x1x16x64xf32>
    %56 = vector.shape_cast %52 : vector<2x64xf32> to vector<1x2x1x64xf32>
    %57 = vector.broadcast %55 : vector<4x1x16x64xf32> to vector<4x2x16x64xf32>
    %58 = vector.broadcast %56 : vector<1x2x1x64xf32> to vector<4x2x16x64xf32>
    %59 = arith.mulf %57, %58 : vector<4x2x16x64xf32>
    %60 = arith.addf %50, %59 : vector<4x2x16x64xf32>
    %c6 = arith.constant 6 : index
    %c0_36 = arith.constant 0 : index
    %c0_37 = arith.constant 0 : index
    %61 = vector.load %arg0[%c6, %c0_36, %c0_37] : memref<8x2x64xf32, #tpu.memory_space<vmem>>, vector<1x2x64xf32>
    %62 = vector.shape_cast %61 : vector<1x2x64xf32> to vector<2x64xf32>
    %c6_38 = arith.constant 6 : index
    %c0_39 = arith.constant 0 : index
    %c0_40 = arith.constant 0 : index
    %c0_41 = arith.constant 0 : index
    %63 = vector.load %arg1[%c6_38, %c0_39, %c0_40, %c0_41] : memref<8x4x16x64xf32, #tpu.memory_space<vmem>>, vector<1x4x16x64xf32>
    %64 = vector.shape_cast %63 : vector<1x4x16x64xf32> to vector<4x16x64xf32>
    %65 = vector.shape_cast %64 : vector<4x16x64xf32> to vector<4x1x16x64xf32>
    %66 = vector.shape_cast %62 : vector<2x64xf32> to vector<1x2x1x64xf32>
    %67 = vector.broadcast %65 : vector<4x1x16x64xf32> to vector<4x2x16x64xf32>
    %68 = vector.broadcast %66 : vector<1x2x1x64xf32> to vector<4x2x16x64xf32>
    %69 = arith.mulf %67, %68 : vector<4x2x16x64xf32>
    %70 = arith.addf %60, %69 : vector<4x2x16x64xf32>
    %c7 = arith.constant 7 : index
    %c0_42 = arith.constant 0 : index
    %c0_43 = arith.constant 0 : index
    %71 = vector.load %arg0[%c7, %c0_42, %c0_43] : memref<8x2x64xf32, #tpu.memory_space<vmem>>, vector<1x2x64xf32>
    %72 = vector.shape_cast %71 : vector<1x2x64xf32> to vector<2x64xf32>
    %c7_44 = arith.constant 7 : index
    %c0_45 = arith.constant 0 : index
    %c0_46 = arith.constant 0 : index
    %c0_47 = arith.constant 0 : index
    %73 = vector.load %arg1[%c7_44, %c0_45, %c0_46, %c0_47] : memref<8x4x16x64xf32, #tpu.memory_space<vmem>>, vector<1x4x16x64xf32>
    %74 = vector.shape_cast %73 : vector<1x4x16x64xf32> to vector<4x16x64xf32>
    %75 = vector.shape_cast %74 : vector<4x16x64xf32> to vector<4x1x16x64xf32>
    %76 = vector.shape_cast %72 : vector<2x64xf32> to vector<1x2x1x64xf32>
    %77 = vector.broadcast %75 : vector<4x1x16x64xf32> to vector<4x2x16x64xf32>
    %78 = vector.broadcast %76 : vector<1x2x1x64xf32> to vector<4x2x16x64xf32>
    %79 = arith.mulf %77, %78 : vector<4x2x16x64xf32>
    %80 = arith.addf %70, %79 : vector<4x2x16x64xf32>
    %cst_48 = arith.constant 0.000000e+00 : f32
    %81 = vector.broadcast %cst_48 : f32 to vector<4x2x1x64xf32>
    %cst_49 = arith.constant 1.562500e-02 : f32
    %82 = vector.broadcast %cst_49 : f32 to vector<4x2x1x64xf32>
    %83 = vector.broadcast %82 : vector<4x2x1x64xf32> to vector<4x2x16x64xf32>
    %84 = arith.mulf %83, %80 : vector<4x2x16x64xf32>
    %cst_50 = arith.constant dense<0.000000e+00> : vector<4x2x16xf32>
    %85 = vector.multi_reduction <add>, %84, %cst_50 [3] : vector<4x2x16x64xf32> to vector<4x2x16xf32>
    %86 = vector.shape_cast %85 : vector<4x2x16xf32> to vector<4x2x16x1xf32>
    %87 = arith.mulf %86, %86 : vector<4x2x16x1xf32>
    %cst_51 = arith.constant dense<0.000000e+00> : vector<4x2x1xf32>
    %88 = vector.multi_reduction <add>, %87, %cst_51 [2] : vector<4x2x16x1xf32> to vector<4x2x1xf32>
    %89 = vector.shape_cast %88 : vector<4x2x1xf32> to vector<4x2x1x1xf32>
    %90 = math.sqrt %89 : vector<4x2x1x1xf32>
    %cst_52 = arith.constant 1.000000e+00 : f32
    %91 = vector.broadcast %cst_52 : f32 to vector<4x2x1x1xf32>
    %92 = arith.addf %91, %89 : vector<4x2x1x1xf32>
    %93 = arith.divf %90, %92 : vector<4x2x1x1xf32>
    %94 = vector.broadcast %93 : vector<4x2x1x1xf32> to vector<4x2x16x1xf32>
    %95 = arith.mulf %86, %94 : vector<4x2x16x1xf32>
    %96 = vector.broadcast %95 : vector<4x2x16x1xf32> to vector<4x2x16x64xf32>
    %97 = arith.mulf %80, %96 : vector<4x2x16x64xf32>
    %cst_53 = arith.constant dense<0.000000e+00> : vector<4x2x64xf32>
    %98 = vector.multi_reduction <add>, %97, %cst_53 [2] : vector<4x2x16x64xf32> to vector<4x2x64xf32>
    %99 = vector.shape_cast %98 : vector<4x2x64xf32> to vector<4x2x1x64xf32>
    %100 = arith.addf %81, %99 : vector<4x2x1x64xf32>
    %cst_54 = arith.constant dense<0xFF800000> : vector<4x2x1xf32>
    %101 = vector.multi_reduction <maximumf>, %100, %cst_54 [3] : vector<4x2x1x64xf32> to vector<4x2x1xf32>
    %102 = vector.shape_cast %101 : vector<4x2x1xf32> to vector<4x2x1x1xf32>
    %103 = vector.broadcast %102 : vector<4x2x1x1xf32> to vector<4x2x1x64xf32>
    %104 = arith.subf %100, %103 : vector<4x2x1x64xf32>
    %105 = math.exp %104 : vector<4x2x1x64xf32>
    %cst_55 = arith.constant dense<0.000000e+00> : vector<4x2x1xf32>
    %106 = vector.multi_reduction <add>, %105, %cst_55 [3] : vector<4x2x1x64xf32> to vector<4x2x1xf32>
    %107 = vector.shape_cast %106 : vector<4x2x1xf32> to vector<4x2x1x1xf32>
    %108 = vector.broadcast %107 : vector<4x2x1x1xf32> to vector<4x2x1x64xf32>
    %109 = arith.divf %105, %108 : vector<4x2x1x64xf32>
    %110 = vector.broadcast %109 : vector<4x2x1x64xf32> to vector<4x2x16x64xf32>
    %111 = arith.mulf %110, %80 : vector<4x2x16x64xf32>
    %cst_56 = arith.constant dense<0.000000e+00> : vector<4x2x16xf32>
    %112 = vector.multi_reduction <add>, %111, %cst_56 [3] : vector<4x2x16x64xf32> to vector<4x2x16xf32>
    %113 = vector.shape_cast %112 : vector<4x2x16xf32> to vector<4x2x16x1xf32>
    %114 = arith.mulf %113, %113 : vector<4x2x16x1xf32>
    %cst_57 = arith.constant dense<0.000000e+00> : vector<4x2x1xf32>
    %115 = vector.multi_reduction <add>, %114, %cst_57 [2] : vector<4x2x16x1xf32> to vector<4x2x1xf32>
    %116 = vector.shape_cast %115 : vector<4x2x1xf32> to vector<4x2x1x1xf32>
    %117 = math.sqrt %116 : vector<4x2x1x1xf32>
    %cst_58 = arith.constant 1.000000e+00 : f32
    %118 = vector.broadcast %cst_58 : f32 to vector<4x2x1x1xf32>
    %119 = arith.addf %118, %116 : vector<4x2x1x1xf32>
    %120 = arith.divf %117, %119 : vector<4x2x1x1xf32>
    %121 = vector.broadcast %120 : vector<4x2x1x1xf32> to vector<4x2x16x1xf32>
    %122 = arith.mulf %113, %121 : vector<4x2x16x1xf32>
    %123 = vector.broadcast %122 : vector<4x2x16x1xf32> to vector<4x2x16x64xf32>
    %124 = arith.mulf %80, %123 : vector<4x2x16x64xf32>
    %cst_59 = arith.constant dense<0.000000e+00> : vector<4x2x64xf32>
    %125 = vector.multi_reduction <add>, %124, %cst_59 [2] : vector<4x2x16x64xf32> to vector<4x2x64xf32>
    %126 = vector.shape_cast %125 : vector<4x2x64xf32> to vector<4x2x1x64xf32>
    %127 = arith.addf %100, %126 : vector<4x2x1x64xf32>
    %cst_60 = arith.constant dense<0xFF800000> : vector<4x2x1xf32>
    %128 = vector.multi_reduction <maximumf>, %127, %cst_60 [3] : vector<4x2x1x64xf32> to vector<4x2x1xf32>
    %129 = vector.shape_cast %128 : vector<4x2x1xf32> to vector<4x2x1x1xf32>
    %130 = vector.broadcast %129 : vector<4x2x1x1xf32> to vector<4x2x1x64xf32>
    %131 = arith.subf %127, %130 : vector<4x2x1x64xf32>
    %132 = math.exp %131 : vector<4x2x1x64xf32>
    %cst_61 = arith.constant dense<0.000000e+00> : vector<4x2x1xf32>
    %133 = vector.multi_reduction <add>, %132, %cst_61 [3] : vector<4x2x1x64xf32> to vector<4x2x1xf32>
    %134 = vector.shape_cast %133 : vector<4x2x1xf32> to vector<4x2x1x1xf32>
    %135 = vector.broadcast %134 : vector<4x2x1x1xf32> to vector<4x2x1x64xf32>
    %136 = arith.divf %132, %135 : vector<4x2x1x64xf32>
    %137 = vector.broadcast %136 : vector<4x2x1x64xf32> to vector<4x2x16x64xf32>
    %138 = arith.mulf %137, %80 : vector<4x2x16x64xf32>
    %cst_62 = arith.constant dense<0.000000e+00> : vector<4x2x16xf32>
    %139 = vector.multi_reduction <add>, %138, %cst_62 [3] : vector<4x2x16x64xf32> to vector<4x2x16xf32>
    %140 = vector.shape_cast %139 : vector<4x2x16xf32> to vector<4x2x16x1xf32>
    %141 = arith.mulf %140, %140 : vector<4x2x16x1xf32>
    %cst_63 = arith.constant dense<0.000000e+00> : vector<4x2x1xf32>
    %142 = vector.multi_reduction <add>, %141, %cst_63 [2] : vector<4x2x16x1xf32> to vector<4x2x1xf32>
    %143 = vector.shape_cast %142 : vector<4x2x1xf32> to vector<4x2x1x1xf32>
    %144 = math.sqrt %143 : vector<4x2x1x1xf32>
    %cst_64 = arith.constant 1.000000e+00 : f32
    %145 = vector.broadcast %cst_64 : f32 to vector<4x2x1x1xf32>
    %146 = arith.addf %145, %143 : vector<4x2x1x1xf32>
    %147 = arith.divf %144, %146 : vector<4x2x1x1xf32>
    %148 = vector.broadcast %147 : vector<4x2x1x1xf32> to vector<4x2x16x1xf32>
    %149 = arith.mulf %140, %148 : vector<4x2x16x1xf32>
    %150 = vector.shape_cast %149 : vector<4x2x16x1xf32> to vector<4x2x16xf32>
    %c0_65 = arith.constant 0 : index
    %c0_66 = arith.constant 0 : index
    %c0_67 = arith.constant 0 : index
    %151 = vector.load %arg2[%c0_65, %c0_66, %c0_67] : memref<4x2x16xf32, #tpu.memory_space<vmem>>, vector<4x2x16xf32>
    tpu.vector_store %arg2[%c0_65, %c0_66, %c0_67], %150 {strides = array<i32>} : memref<4x2x16xf32, #tpu.memory_space<vmem>>, vector<4x2x16xf32>,
    return
  }
}

</mosaic_0001>

<bundles_post_ra>
// kernel: tpu_custom_call.1
= control target key start
LH: loop header
LB: loop body
LE: loop exit
PB: predicated region body
PF: predicated region fallthrough
CT: control target
= control target key end

     0   :  { %7 = vsyncpa [#allocation3], 0  ;;  %s3390_s0 = inlined_call_operand.hbm [shape: f32[8,2,64], index: 0, kind: input, shape index: {}]   ;;  %s3391_s1 = inlined_call_operand.hbm [shape: f32[8,4,16,64], index: 1, kind: input, shape index: {}]   ;;  %s3392_s2 = inlined_call_operand.hbm [shape: f32[4,2,16], index: 2, kind: output, shape index: {}]  }
   0x1   :  { %8 = vsyncpa [#allocation6], 0 }
   0x2   :  { %9 = vsyncpa [#allocation4], 0  ;;  %s2083_s9 = smov [#allocation2]   ;;  %s2011_s13 = scalar_lea.hbm %s3390_s0, 256 }
   0x3   :  { %s15_s10 = sshll.u32 %s2083_s9, 4  ;;  %p2012_p0 = scmp.ne.s32.totalorder %s3390_s0, %s2011_s13  ;;  %s16_s10 = int_to_ptr.vmem [resolvable:$true] %s15_s10 }
   0x4   :  { %p2015_p1 = scmp.lt.u32.totalorder %s2011_s13, %s3390_s0 }
   0x6   :  { %p2017_p2 = pnand %p2015_p1, %p2012_p0 }
   0x8   :  { %2020 = shalt.err (!%p2017_p2)
}
   0x9   :  { %s2021_s18 = scalar_lea.vmem %s16_s10, 256  ;;  %p2026_p4 = scmp.lt.s32.totalorder %s16_s10, %s16_s10 }
   0xa   :  { %p2022_p3 = scmp.ne.s32.totalorder %s16_s10, %s2021_s18  ;;  %p2027_p5 = scmp.lt.s32.totalorder %s2021_s18, %s2021_s18 }
   0xc   :  { %p2028_p6 = por %p2027_p5, %p2026_p4 }
   0xe   :  { %p2029_p7 = pnand %p2028_p6, %p2022_p3 }
  0x10   :  { %2032 = shalt.err (!%p2029_p7)
}
  0x11   :  { %s2084_s19 = smov 32   ;;  %s2085_s20 = smov 2  }
  0x12   :  { %21 = dma.hbm_to_vmem [thread:$0]  %s3390_s0, 256, %s16_s10, [#allocation3], %s2084_s19, %s2084_s19, %s2085_s20  }
  0x13   :  { %s2086_s23 = smov [#allocation5]   ;;  %s2033_s27 = scalar_lea.hbm %s3391_s1, 8192 }
  0x14   :  { %s27_s24 = sshll.u32 %s2086_s23, 4  ;;  %p2034_p8 = scmp.ne.s32.totalorder %s3391_s1, %s2033_s27  ;;  %s28_s24 = int_to_ptr.vmem [resolvable:$true] %s27_s24 }
  0x15   :  { %p2037_p9 = scmp.lt.u32.totalorder %s2033_s27, %s3391_s1 }
  0x17   :  { %p2039_p10 = pnand %p2037_p9, %p2034_p8 }
  0x19   :  { %2042 = shalt.err (!%p2039_p10)
}
  0x1a   :  { %s2043_s4 = scalar_lea.vmem %s28_s24, 8192  ;;  %p2048_p12 = scmp.lt.s32.totalorder %s28_s24, %s28_s24 }
  0x1b   :  { %p2044_p11 = scmp.ne.s32.totalorder %s28_s24, %s2043_s4  ;;  %p2049_p13 = scmp.lt.s32.totalorder %s2043_s4, %s2043_s4 }
  0x1d   :  { %p2050_p0 = por %p2049_p13, %p2048_p12 }
  0x1f   :  { %p2051_p1 = pnand %p2050_p0, %p2044_p11 }
  0x21   :  { %2054 = shalt.err (!%p2051_p1)
}
  0x22   :  { %s2087_s0 = smov 128   ;;  %s2088_s5 = smov 8  }
  0x23   :  { %33 = dma.hbm_to_vmem [thread:$0]  %s3391_s1, 8192, %s28_s24, [#allocation6], %s2087_s0, %s2087_s0, %s2088_s5  }
  0x24   :  { %2077 = dma.done.wait [#allocation3], 256  }
  0x25   :  { %2078 = vsyncadd [#allocation3], 4294967040 }
  0x26   :  { %2079 = dma.done.wait [#allocation6], 8192  }
  0x27   :  { %2080 = vsyncadd [#allocation6], 4294959104  ;;  %v3393_v0 = vlaneseq  ;;  %v2089_v1 = vmov 1966171168   ;;  %v2143_v11 = vld [vmem:[#allocation5 + $0x18] sm:$0xff]  ;;  %v2204_v40 = vld [vmem:[#allocation5] sm:$0xff] }
  0x28   :  { %v59_v2 = vunpack.c.l.s4 %v2089_v1  ;;  %v1835_v7 = vld.sshfl [vmem:[#allocation2] sm:$0x11 pattern:$0x75316420]  ;;  %3438 = vst [vmem:[#allocation12_spill] sm:$0xff] %v2143_v11  ;;  %v2151_v16 = vld [vmem:[#allocation5 + $0x58] sm:$0xff] }
  0x29   :  { %v2134_v3 = vshrl.u32 %v3393_v0, 7  ;;  %v1836_v9 = vld.sshfl [vmem:[#allocation2 + $0x2] sm:$0x11 pattern:$0x75316420]  ;;  %v57_v10 = vcombine.high %v1835_v7, %v1835_v7  ;;  %3439 = vst [vmem:[#allocation13_spill] sm:$0xff] %v2151_v16 }
  0x2a   :  { %v60_v4 = vunpack.c.0.s8 %v59_v2  ;;  %v133_v12 = vcombine.high %v1836_v9, %v1836_v9  ;;  %v2146_v14 = vld.sshfl [vmem:[#allocation2 + $0x4] sm:$0x11 pattern:$0x75316420]  ;;  %v2165_v22 = vld [vmem:[#allocation5 + $0x98] sm:$0xff]  ;;  %v2217_v46 = vld [vmem:[#allocation5 + $0x40] sm:$0xff] }
  0x2b   :  { %3437 = vst [vmem:[#allocation11_spill] sm:$0xff] %v2134_v3  ;;  %v2140_v6 = vsub.s32 0, %v2134_v3  ;;  %v2157_v19 = vld.sshfl [vmem:[#allocation2 + $0x6] sm:$0x11 pattern:$0x75316420] }
  0x2c   :  { %v2137_v5 = vsub.s32 %v60_v4, %v2134_v3  ;;  %3440 = vst [vmem:[#allocation14_spill] sm:$0xff] %v2165_v22  ;;  %v2171_v25 = vld.sshfl [vmem:[#allocation2 + $0x8] sm:$0x11 pattern:$0x75316420]  ;;  %v2219_v47 = vld [vmem:[#allocation5 + $0x80] sm:$0xff] }
  0x2d   :  { %v2181_v29 = vld [vmem:[#allocation5 + $0xd8] sm:$0xff]  ;;  %v2230_v53 = vld [vmem:[#allocation5 + $0xc0] sm:$0xff]  ;;  %vm662_vm0 = vcmask 523264   ;;  %v2296_v0 = vld [vmem:[#allocation5 + $0x8] sm:$0xff]  ;;  %s2090_s1 = smov [#allocation7]  }
  0x2e   :  { %v64_v8 = vrot.slane %v1835_v7, %v2137_v5  ;;  %v140_v13 = vrot.slane %v1836_v9, %v2137_v5  ;;  %v216_v18 = vrot.slane %v2146_v14, %v2137_v5  ;;  %v2160_v20 = vrot.slane %v57_v10, %v2137_v5  ;;  %3441 = vst [vmem:[#allocation15_spill] sm:$0xff] %v2181_v29  ;;  %v2183_v30 = vld [vmem:[#allocation5 + $0x118] sm:$0xff]  ;;  %v2232_v54 = vld [vmem:[#allocation5 + $0x100] sm:$0xff]  ;;  %v2257_v7 = vld [vmem:[#allocation5 + $0x28] sm:$0xff]  ;;  %s1822_s8 = sshll.u32 %s2090_s1, 4  ;;  %s1823_s8 = int_to_ptr.vmem [resolvable:$true] %s1822_s8 }
  0x2f   :  { %v292_v24 = vrot.slane %v2157_v19, %v2137_v5  ;;  %v2174_v26 = vrot.slane %v133_v12, %v2137_v5  ;;  %3442 = vst [vmem:[#allocation16_spill] sm:$0xff] %v2183_v30  ;;  %v368_v32 = vrot.slane %v2171_v25, %v2137_v5  ;;  %v2189_v33 = vld.sshfl [vmem:[#allocation2 + $0xa] sm:$0x11 pattern:$0x75316420]  ;;  %v2245_v60 = vld [vmem:[#allocation5 + $0x140] sm:$0xff]  ;;  %p2060_p3 = scmp.lt.s32.totalorder %s1823_s8, %s1823_s8 }
  0x30   :  { %v2149_v15 = vrot.slane %v64_v8, %v2140_v6  ;;  %v2163_v21 = vrot.slane %v140_v13, %v2140_v6  ;;  %v2179_v28 = vrot.slane %v216_v18, %v2140_v6  ;;  %v2196_v36 = vld [vmem:[#allocation5 + $0x158] sm:$0xff]  ;;  %v444_v38 = vrot.slane %v2189_v33, %v2137_v5  ;;  %v2247_v61 = vld [vmem:[#allocation5 + $0x180] sm:$0xff]  ;;  %3446 = vst [vmem:[#allocation20_spill] sm:$0xff] %v2257_v7  ;;  %v2259_v8 = vld [vmem:[#allocation5 + $0x68] sm:$0xff]  ;;  %s2055_s9 = scalar_lea.vmem %s1823_s8, 128 }
  0x31   :  { %v2194_v35 = vrot.slane %v292_v24, %v2140_v6  ;;  %3443 = vst [vmem:[#allocation17_spill] sm:$0xff] %v2196_v36  ;;  %v2202_v39 = vld.sshfl [vmem:[#allocation2 + $0xc] sm:$0x11 pattern:$0x75316420]  ;;  %v2209_v42 = vrot.slane %v368_v32, %v2140_v6  ;;  %v2255_v4 = vld [vmem:[#allocation5 + $0x1c0] sm:$0xff]  ;;  %p2056_p2 = scmp.ne.s32.totalorder %s1823_s8, %s2055_s9  ;;  %p2061_p4 = scmp.lt.s32.totalorder %s2055_s9, %s2055_s9 }
  0x32   :  { %v87_v27 = vmul.f32 %v2149_v15, %v2143_v11  ;;  %v163_v34 = vmul.f32 %v2163_v21, %v2151_v16  ;;  %v239_v41 = vmul.f32 %v2179_v28, %v2165_v22  ;;  %v520_v44 = vrot.slane %v2202_v39, %v2137_v5  ;;  %v2215_v45 = vld.sshfl [vmem:[#allocation2 + $0xe] sm:$0x11 pattern:$0x75316420]  ;;  %3447 = vst [vmem:[#allocation21_spill] sm:$0xff] %v2259_v8  ;;  %v2270_v18 = vld [vmem:[#allocation5 + $0xa8] sm:$0xff] }
  0x33   :  { %v315_v49 = vmul.f32 %v2194_v35, %v2181_v29  ;;  %v2224_v50 = vrot.slane %v444_v38, %v2140_v6  ;;  %v2226_v51 = vld [vmem:[#allocation5 + $0x198] sm:$0xff]  ;;  %v391_v55 = vmul.f32 %v2209_v42, %v2183_v30  ;;  %v596_v58 = vrot.slane %v2215_v45, %v2137_v5  ;;  %3448 = vst [vmem:[#allocation22_spill] sm:$0xff] %v2270_v18  ;;  %v2272_v24 = vld [vmem:[#allocation5 + $0xe8] sm:$0xff]  ;;  %p2062_p5 = por %p2061_p4, %p2060_p3 }
  0x34   :  { %v179_v48 = vadd.f32 %v163_v34, %v87_v27  ;;  %3444 = vst [vmem:[#allocation18_spill] sm:$0xff] %v2226_v51  ;;  %v2237_v56 = vrot.slane %v520_v44, %v2140_v6  ;;  %v2239_v57 = vld [vmem:[#allocation5 + $0x1d8] sm:$0xff]  ;;  %v82_v59 = vmul.f32 %v2149_v15, %v2204_v40  ;;  %v158_v1 = vmul.f32 %v2163_v21, %v2217_v46  ;;  %v2280_v44 = vld [vmem:[#allocation5 + $0x168] sm:$0xff] }
  0x35   :  { %3445 = vst [vmem:[#allocation19_spill] sm:$0xff] %v2239_v57  ;;  %v467_v63 = vmul.f32 %v2224_v50, %v2196_v36  ;;  %v234_v2 = vmul.f32 %v2179_v28, %v2219_v47  ;;  %v2264_v10 = vrot.slane %v596_v58, %v2140_v6  ;;  %v310_v12 = vmul.f32 %v2194_v35, %v2230_v53  ;;  %v2302_v23 = vld [vmem:[#allocation5 + $0x48] sm:$0xff]  ;;  %v2342_v30 = vld [vmem:[#allocation5 + $0xf8] sm:$0xff]  ;;  %p2063_p6 = pnand %p2062_p5, %p2056_p2 }
  0x36   :  { %v255_v62 = vadd.f32 %v239_v41, %v179_v48  ;;  %v543_v9 = vmul.f32 %v2237_v56, %v2226_v51  ;;  %v386_v13 = vmul.f32 %v2209_v42, %v2232_v54  ;;  %3449 = vst [vmem:[#allocation23_spill] sm:$0xff] %v2272_v24  ;;  %v174_v32 = vadd.f32 %v158_v1, %v82_v59  ;;  %v2278_v41 = vld [vmem:[#allocation5 + $0x128] sm:$0xff] }
  0x37   :  { %v462_v34 = vmul.f32 %v2224_v50, %v2245_v60  ;;  %v538_v38 = vmul.f32 %v2237_v56, %v2247_v61  ;;  %3450 = vst [vmem:[#allocation24_spill] sm:$0xff] %v2278_v41  ;;  %3451 = vst [vmem:[#allocation25_spill] sm:$0xff] %v2280_v44  ;;  %v2282_v48 = vld [vmem:[#allocation5 + $0x1a8] sm:$0xff]  ;;  %v619_v58 = vmul.f32 %v2264_v10, %v2239_v57 }
  0x38   :  { %v331_v27 = vadd.f32 %v315_v49, %v255_v62  ;;  %3452 = vst [vmem:[#allocation26_spill] sm:$0xff] %v2282_v48  ;;  %v2288_v49 = vmul.f32 %v2264_v10, %v2255_v4  ;;  %v91_v59 = vmul.f32 %v2149_v15, %v2257_v7  ;;  %v167_v62 = vmul.f32 %v2163_v21, %v2259_v8  ;;  %v2294_v1 = vld [vmem:[#allocation5 + $0x1e8] sm:$0xff] }
  0x39   :  { %3453 = vst [vmem:[#allocation27_spill] sm:$0xff] %v2294_v1  ;;  %v250_v43 = vadd.f32 %v234_v2, %v174_v32  ;;  %v243_v37 = vmul.f32 %v2179_v28, %v2270_v18  ;;  %v319_v31 = vmul.f32 %v2194_v35, %v2272_v24  ;;  %v2304_v17 = vld [vmem:[#allocation5 + $0x88] sm:$0xff]  ;;  %v395_v8 = vmul.f32 %v2209_v42, %v2278_v41 }
  0x3a   :  { %v407_v52 = vadd.f32 %v391_v55, %v331_v27  ;;  %v2306_v3 = vld [vmem:[#allocation5 + $0xc8] sm:$0xff]  ;;  %v183_v7 = vadd.f32 %v167_v62, %v91_v59  ;;  %v471_v55 = vmul.f32 %v2224_v50, %v2280_v44  ;;  %v547_v2 = vmul.f32 %v2237_v56, %v2282_v48  ;;  %3461 = vst [vmem:[#allocation35_spill] sm:$0xff] %v2342_v30 }
  0x3b   :  { %v2314_v27 = vld [vmem:[#allocation5 + $0x108] sm:$0xff]  ;;  %v326_v18 = vadd.f32 %v310_v12, %v250_v43  ;;  %v623_v57 = vmul.f32 %v2264_v10, %v2294_v1  ;;  %v83_v59 = vmul.f32 %v2149_v15, %v2296_v0  ;;  %v159_v48 = vmul.f32 %v2163_v21, %v2302_v23 }
  0x3c   :  { %3454 = vst [vmem:[#allocation28_spill] sm:$0xff] %v2314_v27  ;;  %v2316_v32 = vld [vmem:[#allocation5 + $0x148] sm:$0xff]  ;;  %v483_v24 = vadd.f32 %v467_v63, %v407_v52  ;;  %v259_v44 = vadd.f32 %v243_v37, %v183_v7  ;;  %v235_v51 = vmul.f32 %v2179_v28, %v2304_v17  ;;  %v311_v43 = vmul.f32 %v2194_v35, %v2306_v3  ;;  %v2332_v52 = vld [vmem:[#allocation5 + $0x38] sm:$0xff] }
  0x3d   :  { %3455 = vst [vmem:[#allocation29_spill] sm:$0xff] %v2316_v32  ;;  %v2322_v62 = vld [vmem:[#allocation5 + $0x188] sm:$0xff]  ;;  %3458 = vst [vmem:[#allocation32_spill] sm:$0xff] %v2332_v52  ;;  %v2334_v63 = vld [vmem:[#allocation5 + $0x78] sm:$0xff]  ;;  %v402_v1 = vadd.f32 %v386_v13, %v326_v18  ;;  %v387_v36 = vmul.f32 %v2209_v42, %v2314_v27  ;;  %v463_v37 = vmul.f32 %v2224_v50, %v2316_v32 }
  0x3e   :  { %3456 = vst [vmem:[#allocation30_spill] sm:$0xff] %v2322_v62  ;;  %v2324_v41 = vld [vmem:[#allocation5 + $0x1c8] sm:$0xff]  ;;  %3459 = vst [vmem:[#allocation33_spill] sm:$0xff] %v2334_v63  ;;  %v559_v12 = vadd.f32 %v543_v9, %v483_v24  ;;  %v2340_v7 = vld [vmem:[#allocation5 + $0xb8] sm:$0xff]  ;;  %v335_v29 = vadd.f32 %v319_v31, %v259_v44  ;;  %v175_v22 = vadd.f32 %v159_v48, %v83_v59 }
  0x3f   :  { %3457 = vst [vmem:[#allocation31_spill] sm:$0xff] %v2324_v41  ;;  %3460 = vst [vmem:[#allocation34_spill] sm:$0xff] %v2340_v7  ;;  %v539_v16 = vmul.f32 %v2237_v56, %v2322_v62  ;;  %v2348_v11 = vmul.f32 %v2264_v10, %v2324_v41  ;;  %v2350_v9 = vld [vmem:[#allocation5 + $0x138] sm:$0xff]  ;;  %v478_v18 = vadd.f32 %v462_v34, %v402_v1  ;;  %v2371_v62 = vld [vmem:[#allocation5 + $0x10] sm:$0xff] }
  0x40   :  { %3462 = vst [vmem:[#allocation36_spill] sm:$0xff] %v2350_v9  ;;  %v2352_v13 = vadd.f32 %v619_v58, %v559_v12  ;;  %v95_v24 = vmul.f32 %v2149_v15, %v2332_v52  ;;  %v171_v32 = vmul.f32 %v2163_v21, %v2334_v63  ;;  %v2358_v31 = vld [vmem:[#allocation5 + $0x178] sm:$0xff]  ;;  %v411_v48 = vadd.f32 %v395_v8, %v335_v29  ;;  %v2373_v27 = vld [vmem:[#allocation5 + $0x50] sm:$0xff] }
  0x41   :  { %3464 = vst [vmem:[#allocation38_spill] sm:$0xff] %v2358_v31  ;;  %v2360_v44 = vld [vmem:[#allocation5 + $0x1b8] sm:$0xff]  ;;  %v251_v59 = vadd.f32 %v235_v51, %v175_v22  ;;  %v247_v41 = vmul.f32 %v2179_v28, %v2340_v7  ;;  %v323_v58 = vmul.f32 %v2194_v35, %v2342_v30  ;;  %v554_v1 = vadd.f32 %v538_v38, %v478_v18  ;;  %v2379_v30 = vld [vmem:[#allocation5 + $0x90] sm:$0xff] }
  0x42   :  { %3463 = vst [vmem:[#allocation37_spill] sm:$0xff] %v2352_v13  ;;  %3465 = vst [vmem:[#allocation39_spill] sm:$0xff] %v2360_v44  ;;  %v2366_v12 = vld [vmem:[#allocation5 + $0x1f8] sm:$0xff]  ;;  %v651_v34 = vmul.f32 0.015625, %v2352_v13  ;;  %v187_v52 = vadd.f32 %v171_v32, %v95_v24  ;;  %v399_v63 = vmul.f32 %v2209_v42, %v2350_v9  ;;  %v487_v22 = vadd.f32 %v471_v55, %v411_v48  ;;  %v2381_v13 = vld [vmem:[#allocation5 + $0xd0] sm:$0xff] }
  0x43   :  { %3466 = vst [vmem:[#allocation40_spill] sm:$0xff] %v2366_v12  ;;  %v327_v29 = vadd.f32 %v311_v43, %v251_v59  ;;  %v475_v51 = vmul.f32 %v2224_v50, %v2358_v31  ;;  %v551_v8 = vmul.f32 %v2237_v56, %v2360_v44  ;;  %v2385_v32 = vadd.f32 %v2288_v49, %v554_v1  ;;  %v2389_v43 = vld [vmem:[#allocation5 + $0x110] sm:$0xff]  ;;  %v2412_v9 = vld [vmem:[#allocation5 + $0x60] sm:$0xff] }
  0x44   :  { %v678_v38 = vsel %vm662_vm0, %v651_v34, 0.0  ;;  %v263_v18 = vadd.f32 %v247_v41, %v187_v52  ;;  %v627_v55 = vmul.f32 %v2264_v10, %v2366_v12  ;;  %3468 = vst [vmem:[#allocation42_spill] sm:$0xff] %v2389_v43  ;;  %v563_v24 = vadd.f32 %v547_v2, %v487_v22  ;;  %v2395_v31 = vld [vmem:[#allocation5 + $0x150] sm:$0xff]  ;;  %v2410_v12 = vld [vmem:[#allocation5 + $0x20] sm:$0xff]  ;;  %3474 = vst [vmem:[#allocation48_spill] sm:$0xff] %v2412_v9 }
  0x45   :  { %3467 = vst [vmem:[#allocation41_spill] sm:$0xff] %v2385_v32  ;;  %679 = vadd.xlane.f32.xlu1 %v678_v38  ;;  %v403_v48 = vadd.f32 %v387_v36, %v327_v29  ;;  %v86_v59 = vmul.f32 %v2149_v15, %v2371_v62  ;;  %v162_v44 = vmul.f32 %v2163_v21, %v2373_v27  ;;  %3469 = vst [vmem:[#allocation43_spill] sm:$0xff] %v2395_v31  ;;  %v2397_v34 = vld [vmem:[#allocation5 + $0x190] sm:$0xff] }
  0x46   :  { %3470 = vst [vmem:[#allocation44_spill] sm:$0xff] %v2397_v34  ;;  %v646_v41 = vmul.f32 0.015625, %v2385_v32  ;;  %v339_v49 = vadd.f32 %v323_v58, %v263_v18  ;;  %v238_v52 = vmul.f32 %v2179_v28, %v2379_v30  ;;  %v314_v2 = vmul.f32 %v2194_v35, %v2381_v13  ;;  %v2404_v36 = vld [vmem:[#allocation5 + $0x1d0] sm:$0xff]  ;;  %3473 = vst [vmem:[#allocation47_spill] sm:$0xff] %v2410_v12  ;;  %v2414_v58 = vld [vmem:[#allocation5 + $0xa0] sm:$0xff] }
  0x47   :  { %3471 = vst [vmem:[#allocation45_spill] sm:$0xff] %v2404_v36  ;;  %v2406_v1 = vadd.f32 %v623_v57, %v563_v24  ;;  %v479_v22 = vadd.f32 %v463_v37, %v403_v48  ;;  %v178_v29 = vadd.f32 %v162_v44, %v86_v59  ;;  %v390_v38 = vmul.f32 %v2209_v42, %v2389_v43  ;;  %v2421_v37 = vld [vmem:[#allocation5 + $0xe0] sm:$0xff] }
  0x48   :  { %3475 = vst [vmem:[#allocation49_spill] sm:$0xff] %v2414_v58  ;;  %v663_v18 = vsel %vm662_vm0, %v646_v41, 0.0  ;;  %v415_v32 = vadd.f32 %v399_v63, %v339_v49  ;;  %v466_v7 = vmul.f32 %v2224_v50, %v2395_v31  ;;  %v542_v57 = vmul.f32 %v2237_v56, %v2397_v34  ;;  %v2426_v43 = vld [vmem:[#allocation5 + $0x120] sm:$0xff] }
  0x49   :  { %3472 = vst [vmem:[#allocation46_spill] sm:$0xff] %v2406_v1  ;;  %664 = vadd.xlane.f32.xlu0 %v663_v18  ;;  %v655_v44 = vmul.f32 0.015625, %v2406_v1  ;;  %v555_v24 = vadd.f32 %v539_v16, %v479_v22  ;;  %v254_v48 = vadd.f32 %v238_v52, %v178_v29  ;;  %v618_v59 = vmul.f32 %v2264_v10, %v2404_v36  ;;  %v2428_v41 = vld [vmem:[#allocation5 + $0x160] sm:$0xff] }
  0x4a   :  { %v491_v63 = vadd.f32 %v475_v51, %v415_v32  ;;  %v90_v49 = vmul.f32 %v2149_v15, %v2410_v12  ;;  %v166_v34 = vmul.f32 %v2163_v21, %v2412_v9  ;;  %v242_v18 = vmul.f32 %v2179_v28, %v2414_v58  ;;  %v2436_v1 = vld [vmem:[#allocation5 + $0x1a0] sm:$0xff] }
  0x4b   :  { %v2438_v16 = vld [vmem:[#allocation5 + $0x1e0] sm:$0xff]  ;;  %v690_v52 = vsel %vm662_vm0, %v655_v44, 0.0  ;;  %v2442_v22 = vadd.f32 %v2348_v11, %v555_v24  ;;  %v330_v29 = vadd.f32 %v314_v2, %v254_v48  ;;  %v318_v51 = vmul.f32 %v2194_v35, %v2421_v37 }
  0x4c   :  { %691 = vadd.xlane.f32.xlu1 %v690_v52  ;;  %v567_v32 = vadd.f32 %v551_v8, %v491_v63  ;;  %v182_v12 = vadd.f32 %v166_v34, %v90_v49  ;;  %v394_v9 = vmul.f32 %v2209_v42, %v2426_v43  ;;  %v470_v58 = vmul.f32 %v2224_v50, %v2428_v41 }
  0x4d   :  { %v647_v36 = vmul.f32 0.015625, %v2442_v22  ;;  %v406_v31 = vadd.f32 %v390_v38, %v330_v29  ;;  %v546_v11 = vmul.f32 %v2237_v56, %v2436_v1  ;;  %v622_v2 = vmul.f32 %v2264_v10, %v2438_v16 }
  0x4e   :  { %v2455_v44 = vadd.f32 %v627_v55, %v567_v32  ;;  %v258_v24 = vadd.f32 %v242_v18, %v182_v12  ;;  %v2459_v8 = vrot.slane %v2160_v20, %v2140_v6  ;;  %v2463_v34 = vrot.slane %v2174_v26, %v2140_v6 }
  0x4f   :  { %v666_v48 = vsel %vm662_vm0, %v647_v36, 0.0  ;;  %v482_v38 = vadd.f32 %v466_v7, %v406_v31  ;;  %v3476_v63 = vcombine.high %v2146_v14, %v2146_v14  ;;  %v3477_v12 = vcombine.high %v2157_v19, %v2157_v19 }
  0x50   :  { %667 = vadd.xlane.f32.xlu0 %v666_v48  ;;  %v659_v20 = vmul.f32 0.015625, %v2455_v44  ;;  %v334_v18 = vadd.f32 %v318_v51, %v258_v24  ;;  %v84_v26 = vmul.f32 %v2459_v8, %v2204_v40  ;;  %v160_v7 = vmul.f32 %v2463_v34, %v2217_v46 }
  0x51   :  { %v223_v49 = vrot.slane %v3476_v63, %v2137_v5  ;;  %v299_v55 = vrot.slane %v3477_v12, %v2137_v5  ;;  %v558_v31 = vadd.f32 %v542_v57, %v482_v38  ;;  %v3478_v19 = vcombine.high %v2171_v25, %v2171_v25  ;;  %v2494_v57 = vld [vmem:[#allocation5 + $0x30] sm:$0xff] }
  0x52   :  { %v702_v29 = vsel %vm662_vm0, %v659_v20, 0.0  ;;  %v410_v51 = vadd.f32 %v394_v9, %v334_v18  ;;  %v176_v32 = vadd.f32 %v160_v7, %v84_v26  ;;  %v3479_v40 = vcombine.high %v2189_v33, %v2189_v33  ;;  %v2516_v12 = vld [vmem:[#allocation5 + $0x70] sm:$0xff] }
  0x53   :  { %v2480_v36 = vrot.slane %v223_v49, %v2140_v6  ;;  %v2483_v14 = vrot.slane %v299_v55, %v2140_v6  ;;  %v375_v52 = vrot.slane %v3478_v19, %v2137_v5  ;;  %703 = vadd.xlane.f32.xlu1 %v702_v29  ;;  %v2496_v24 = vadd.f32 %v618_v59, %v558_v31  ;;  %v2533_v7 = vld [vmem:[#allocation5 + $0xf0] sm:$0xff] }
  0x54   :  { %v451_v46 = vrot.slane %v3479_v40, %v2137_v5  ;;  %v486_v9 = vadd.f32 %v470_v58, %v410_v51  ;;  %v3480_v33 = vcombine.high %v2202_v39, %v2202_v39  ;;  %v3481_v59 = vcombine.high %v2215_v45, %v2215_v45  ;;  %v2550_v40 = vld [vmem:[#allocation5 + $0x1b0] sm:$0xff] }
  0x55   :  { %v236_v48 = vmul.f32 %v2480_v36, %v2219_v47  ;;  %v312_v25 = vmul.f32 %v2483_v14, %v2230_v53  ;;  %v2503_v38 = vrot.slane %v375_v52, %v2140_v6  ;;  %v2518_v53 = vld [vmem:[#allocation5 + $0xb0] sm:$0xff]  ;;  %v650_v55 = vmul.f32 0.015625, %v2496_v24 }
  0x56   :  { %v2506_v63 = vrot.slane %v451_v46, %v2140_v6  ;;  %v527_v49 = vrot.slane %v3480_v33, %v2137_v5  ;;  %v603_v47 = vrot.slane %v3481_v59, %v2137_v5  ;;  %v94_v18 = vmul.f32 %v2149_v15, %v2494_v57 }
  0x57   :  { %v252_v58 = vadd.f32 %v236_v48, %v176_v32  ;;  %v388_v20 = vmul.f32 %v2503_v38, %v2232_v54  ;;  %v562_v39 = vadd.f32 %v546_v11, %v486_v9  ;;  %v675_v31 = vsel %vm662_vm0, %v650_v55, 0.0  ;;  %v2540_v11 = vld [vmem:[#allocation5 + $0x130] sm:$0xff] }
  0x58   :  { %v464_v26 = vmul.f32 %v2506_v63, %v2245_v60  ;;  %v2528_v45 = vrot.slane %v527_v49, %v2140_v6  ;;  %v2531_v5 = vrot.slane %v603_v47, %v2140_v6  ;;  %v170_v54 = vmul.f32 %v2163_v21, %v2516_v12  ;;  %676 = vadd.xlane.f32.xlu0 %v675_v31  ;;  %v2548_v32 = vld [vmem:[#allocation5 + $0x170] sm:$0xff] }
  0x59   :  { %v328_v19 = vadd.f32 %v312_v25, %v252_v58  ;;  %v246_v15 = vmul.f32 %v2179_v28, %v2518_v53  ;;  %v2542_v60 = vadd.f32 %v622_v2, %v562_v39  ;;  %v322_v51 = vmul.f32 %v2194_v35, %v2533_v7  ;;  %v2552_v21 = vld [vmem:[#allocation5 + $0x1f0] sm:$0xff]  ;;  %v3483_v39 = vld [vmem:[#allocation29_spill] sm:$0xff] }
  0x5a   :  { %v540_v6 = vmul.f32 %v2528_v45, %v2247_v61  ;;  %v186_v29 = vadd.f32 %v170_v54, %v94_v18  ;;  %v616_v2 = vmul.f32 %v2531_v5, %v2255_v4  ;;  %v398_v46 = vmul.f32 %v2209_v42, %v2540_v11  ;;  %v3482_v55 = vld [vmem:[#allocation28_spill] sm:$0xff] }
  0x5b   :  { %v404_v52 = vadd.f32 %v388_v20, %v328_v19  ;;  %v654_v28 = vmul.f32 0.015625, %v2542_v60  ;;  %v85_v61 = vmul.f32 %v2459_v8, %v2296_v0  ;;  %v161_v35 = vmul.f32 %v2463_v34, %v2302_v23  ;;  %v3485_v19 = vld [vmem:[#allocation31_spill] sm:$0xff] }
  0x5c   :  { %v262_v25 = vadd.f32 %v246_v15, %v186_v29  ;;  %v237_v9 = vmul.f32 %v2480_v36, %v2304_v17  ;;  %v474_v49 = vmul.f32 %v2224_v50, %v2548_v32  ;;  %v550_v4 = vmul.f32 %v2237_v56, %v2550_v40 }
  0x5d   :  { %v480_v48 = vadd.f32 %v464_v26, %v404_v52  ;;  %v687_v33 = vsel %vm662_vm0, %v654_v28, 0.0  ;;  %v626_v42 = vmul.f32 %v2264_v10, %v2552_v21  ;;  %v177_v47 = vadd.f32 %v161_v35, %v85_v61  ;;  %v3487_v28 = vld [vmem:[#allocation12_spill] sm:$0xff] }
  0x5e   :  { %688 = vadd.xlane.f32.xlu0 %v687_v33  ;;  %v338_v59 = vadd.f32 %v322_v51, %v262_v25  ;;  %v313_v23 = vmul.f32 %v2483_v14, %v2306_v3  ;;  %v389_v17 = vmul.f32 %v2503_v38, %v3482_v55  ;;  %v88_v58 = vmul.f32 %v2459_v8, %v2371_v62  ;;  %v3484_v3 = vld [vmem:[#allocation30_spill] sm:$0xff]  ;;  %v3490_v33 = vld [vmem:[#allocation43_spill] sm:$0xff] }
  0x5f   :  { %v556_v0 = vadd.f32 %v540_v6, %v480_v48  ;;  %v164_v50 = vmul.f32 %v2463_v34, %v2373_v27  ;;  %v240_v56 = vmul.f32 %v2480_v36, %v2379_v30  ;;  %v253_v18 = vadd.f32 %v237_v9, %v177_v47  ;;  %v3486_v6 = vld [vmem:[#allocation42_spill] sm:$0xff]  ;;  %v3492_v55 = vld [vmem:[#allocation15_spill] sm:$0xff] }
  0x60   :  { %v414_v20 = vadd.f32 %v398_v46, %v338_v59  ;;  %v465_v26 = vmul.f32 %v2506_v63, %v3483_v39  ;;  %v541_v31 = vmul.f32 %v2528_v45, %v3484_v3  ;;  %v617_v54 = vmul.f32 %v2531_v5, %v3485_v19  ;;  %v3488_v46 = vld [vmem:[#allocation13_spill] sm:$0xff]  ;;  %v3489_v48 = vld [vmem:[#allocation14_spill] sm:$0xff]  ;;  %v3491_v59 = vld [vmem:[#allocation44_spill] sm:$0xff] }
  0x61   :  { %v2582_v10 = vadd.f32 %v616_v2, %v556_v0  ;;  %v180_v62 = vadd.f32 %v164_v50, %v88_v58  ;;  %v316_v27 = vmul.f32 %v2483_v14, %v2381_v13  ;;  %v329_v52 = vadd.f32 %v313_v23, %v253_v18  ;;  %v3495_v19 = vld [vmem:[#allocation47_spill] sm:$0xff] }
  0x62   :  { %v490_v30 = vadd.f32 %v474_v49, %v414_v20  ;;  %v392_v29 = vmul.f32 %v2503_v38, %v3486_v6  ;;  %v89_v2 = vmul.f32 %v2459_v8, %v3487_v28  ;;  %v165_v61 = vmul.f32 %v2463_v34, %v3488_v46  ;;  %v3493_v20 = vld [vmem:[#allocation45_spill] sm:$0xff] }
  0x63   :  { %v648_v15 = vmul.f32 0.015625, %v2582_v10  ;;  %v256_v51 = vadd.f32 %v240_v56, %v180_v62  ;;  %v241_v25 = vmul.f32 %v2480_v36, %v3489_v48  ;;  %v405_v9 = vadd.f32 %v389_v17, %v329_v52  ;;  %v3498_v6 = vld [vmem:[#allocation49_spill] sm:$0xff] }
  0x64   :  { %v566_v13 = vadd.f32 %v550_v4, %v490_v30  ;;  %v468_v49 = vmul.f32 %v2506_v63, %v3490_v33  ;;  %v544_v47 = vmul.f32 %v2528_v45, %v3491_v59  ;;  %v181_v23 = vadd.f32 %v165_v61, %v89_v2  ;;  %v3494_v4 = vld [vmem:[#allocation16_spill] sm:$0xff] }
  0x65   :  { %v669_v35 = vsel %vm662_vm0, %v648_v15, 0.0  ;;  %v332_v0 = vadd.f32 %v316_v27, %v256_v51  ;;  %v317_v58 = vmul.f32 %v2483_v14, %v3492_v55  ;;  %v481_v56 = vadd.f32 %v465_v26, %v405_v9  ;;  %v3496_v27 = vld [vmem:[#allocation48_spill] sm:$0xff] }
  0x66   :  { %670 = vadd.xlane.f32.xlu1 %v669_v35  ;;  %v2608_v50 = vadd.f32 %v626_v42, %v566_v13  ;;  %v620_v18 = vmul.f32 %v2531_v5, %v3493_v20  ;;  %v393_v17 = vmul.f32 %v2503_v38, %v3494_v4  ;;  %v257_v3 = vadd.f32 %v241_v25, %v181_v23  ;;  %v3497_v42 = vld [vmem:[#allocation17_spill] sm:$0xff]  ;;  %v3499_v25 = vld [vmem:[#allocation18_spill] sm:$0xff] }
  0x67   :  { %v408_v39 = vadd.f32 %v392_v29, %v332_v0  ;;  %v92_v62 = vmul.f32 %v2459_v8, %v3495_v19  ;;  %v168_v15 = vmul.f32 %v2463_v34, %v3496_v27  ;;  %v557_v52 = vadd.f32 %v541_v31, %v481_v56  ;;  %v3500_v31 = vld [vmem:[#allocation19_spill] sm:$0xff] }
  0x68   :  { %v658_v30 = vmul.f32 0.015625, %v2608_v50  ;;  %v469_v26 = vmul.f32 %v2506_v63, %v3497_v42  ;;  %v244_v51 = vmul.f32 %v2480_v36, %v3498_v6  ;;  %v333_v2 = vadd.f32 %v317_v58, %v257_v3  ;;  %v3503_v58 = vld [vmem:[#allocation22_spill] sm:$0xff]  ;;  %v3504_v19 = vld [vmem:[#allocation23_spill] sm:$0xff]  ;;  %v3505_v42 = vld [vmem:[#allocation24_spill] sm:$0xff] }
  0x69   :  { %v484_v28 = vadd.f32 %v468_v49, %v408_v39  ;;  %v184_v46 = vadd.f32 %v168_v15, %v92_v62  ;;  %v320_v29 = vmul.f32 %v2483_v14, %v2421_v37  ;;  %v2626_v48 = vadd.f32 %v617_v54, %v557_v52  ;;  %v3501_v37 = vld [vmem:[#allocation20_spill] sm:$0xff]  ;;  %v3502_v54 = vld [vmem:[#allocation21_spill] sm:$0xff] }
  0x6a   :  { %v699_v61 = vsel %vm662_vm0, %v658_v30, 0.0  ;;  %v545_v35 = vmul.f32 %v2528_v45, %v3499_v25  ;;  %v621_v13 = vmul.f32 %v2531_v5, %v3500_v31  ;;  %v409_v33 = vadd.f32 %v393_v17, %v333_v2 }
  0x6b   :  { %700 = vadd.xlane.f32.xlu0 %v699_v61  ;;  %v560_v9 = vadd.f32 %v544_v47, %v484_v28  ;;  %v260_v0 = vadd.f32 %v244_v51, %v184_v46  ;;  %v396_v49 = vmul.f32 %v2503_v38, %v2426_v43  ;;  %v649_v59 = vmul.f32 0.015625, %v2626_v48  ;;  %v3506_v46 = vld [vmem:[#allocation25_spill] sm:$0xff] }
  0x6c   :  { %v93_v23 = vmul.f32 %v2459_v8, %v3501_v37  ;;  %v169_v55 = vmul.f32 %v2463_v34, %v3502_v54  ;;  %v245_v56 = vmul.f32 %v2480_v36, %v3503_v58  ;;  %v485_v4 = vadd.f32 %v469_v26, %v409_v33  ;;  %v3508_v33 = vld [vmem:[#allocation32_spill] sm:$0xff]  ;;  %v3509_v37 = vld [vmem:[#allocation33_spill] sm:$0xff]  ;;  %v3511_v58 = vld [vmem:[#allocation27_spill] sm:$0xff] }
  0x6d   :  { %v2641_v20 = vadd.f32 %v620_v18, %v560_v9  ;;  %v336_v47 = vadd.f32 %v320_v29, %v260_v0  ;;  %v472_v17 = vmul.f32 %v2506_v63, %v2428_v41  ;;  %v672_v43 = vsel %vm662_vm0, %v649_v59, 0.0 }
  0x6e   :  { %v548_v39 = vmul.f32 %v2528_v45, %v2436_v1  ;;  %v185_v3 = vadd.f32 %v169_v55, %v93_v23  ;;  %v321_v62 = vmul.f32 %v2483_v14, %v3504_v19  ;;  %673 = vadd.xlane.f32.xlu1 %v672_v43  ;;  %v561_v15 = vadd.f32 %v545_v35, %v485_v4  ;;  %v3507_v35 = vld [vmem:[#allocation26_spill] sm:$0xff] }
  0x6f   :  { %v652_v27 = vmul.f32 0.015625, %v2641_v20  ;;  %v412_v18 = vadd.f32 %v396_v49, %v336_v47  ;;  %v624_v30 = vmul.f32 %v2531_v5, %v2438_v16  ;;  %v397_v41 = vmul.f32 %v2503_v38, %v3505_v42  ;;  %v3510_v23 = vld [vmem:[#allocation34_spill] sm:$0xff] }
  0x70   :  { %v261_v52 = vadd.f32 %v245_v56, %v185_v3  ;;  %v96_v26 = vmul.f32 %v2459_v8, %v2494_v57  ;;  %v172_v1 = vmul.f32 %v2463_v34, %v2516_v12  ;;  %v2660_v51 = vadd.f32 %v621_v13, %v561_v15 }
  0x71   :  { %v681_v6 = vsel %vm662_vm0, %v652_v27, 0.0  ;;  %v488_v28 = vadd.f32 %v472_v17, %v412_v18  ;;  %v248_v2 = vmul.f32 %v2480_v36, %v2518_v53  ;;  %v473_v29 = vmul.f32 %v2506_v63, %v3506_v46  ;;  %v3512_v17 = vld [vmem:[#allocation35_spill] sm:$0xff] }
  0x72   :  { %682 = vadd.xlane.f32.xlu0 %v681_v6  ;;  %v337_v16 = vadd.f32 %v321_v62, %v261_v52  ;;  %v188_v61 = vadd.f32 %v172_v1, %v96_v26  ;;  %v324_v57 = vmul.f32 %v2483_v14, %v2533_v7  ;;  %v653_v25 = vmul.f32 0.015625, %v2660_v51  ;;  %v3513_v62 = vld [vmem:[#allocation36_spill] sm:$0xff]  ;;  %v3515_v26 = vld [vmem:[#allocation39_spill] sm:$0xff] }
  0x73   :  { %v564_v12 = vadd.f32 %v548_v39, %v488_v28  ;;  %v549_v31 = vmul.f32 %v2528_v45, %v3507_v35  ;;  %v400_v53 = vmul.f32 %v2503_v38, %v2540_v11  ;;  %v97_v0 = vmul.f32 %v2459_v8, %v3508_v33 }
  0x74   :  { %v413_v13 = vadd.f32 %v397_v41, %v337_v16  ;;  %v264_v9 = vadd.f32 %v248_v2, %v188_v61  ;;  %v684_v49 = vsel %vm662_vm0, %v653_v25, 0.0  ;;  %v173_v7 = vmul.f32 %v2463_v34, %v3509_v37  ;;  %v3516_v2 = vld [vmem:[#allocation40_spill] sm:$0xff] }
  0x75   :  { %v2676_v59 = vadd.f32 %v624_v30, %v564_v12  ;;  %v249_v54 = vmul.f32 %v2480_v36, %v3510_v23  ;;  %685 = vadd.xlane.f32.xlu1 %v684_v49  ;;  %v625_v56 = vmul.f32 %v2531_v5, %v3511_v58  ;;  %v476_v11 = vmul.f32 %v2506_v63, %v2548_v32 }
  0x76   :  { %v489_v55 = vadd.f32 %v473_v29, %v413_v13  ;;  %v340_v4 = vadd.f32 %v324_v57, %v264_v9  ;;  %v189_v47 = vadd.f32 %v173_v7, %v97_v0  ;;  %v325_v43 = vmul.f32 %v2483_v14, %v3512_v17  ;;  %v3514_v14 = vld [vmem:[#allocation38_spill] sm:$0xff] }
  0x77   :  { %v656_v8 = vmul.f32 0.015625, %v2676_v59  ;;  %v552_v36 = vmul.f32 %v2528_v45, %v2550_v40  ;;  %v401_v27 = vmul.f32 %v2503_v38, %v3513_v62  ;;  %v628_v18 = vmul.f32 %v2531_v5, %v2552_v21 }
  0x78   :  { %v565_v39 = vadd.f32 %v549_v31, %v489_v55  ;;  %v416_v34 = vadd.f32 %v400_v53, %v340_v4  ;;  %v265_v19 = vadd.f32 %v249_v54, %v189_v47  ;;  %v477_v52 = vmul.f32 %v2506_v63, %v3514_v14 }
  0x79   :  { %v693_v3 = vsel %vm662_vm0, %v656_v8, 0.0  ;;  %v553_v1 = vmul.f32 %v2528_v45, %v3515_v26  ;;  %v629_v21 = vmul.f32 %v2531_v5, %v3516_v2 }
  0x7a   :  { %694 = vadd.xlane.f32.xlu0 %v693_v3  ;;  %v2694_v15 = vadd.f32 %v625_v56, %v565_v39  ;;  %v492_v32 = vadd.f32 %v476_v11, %v416_v34  ;;  %v341_v30 = vadd.f32 %v325_v43, %v265_v19 }
  0x7c   :  { %v657_v42 = vmul.f32 0.015625, %v2694_v15  ;;  %v568_v40 = vadd.f32 %v552_v36, %v492_v32  ;;  %v417_v41 = vadd.f32 %v401_v27, %v341_v30 }
  0x7e   :  { %v696_v38 = vsel %vm662_vm0, %v657_v42, 0.0  ;;  %v2704_v6 = vadd.f32 %v628_v18, %v568_v40  ;;  %v493_v28 = vadd.f32 %v477_v52, %v417_v41 }
  0x7f   :  { %697 = vadd.xlane.f32.xlu1 %v696_v38 }
  0x80   :  { %v660_v16 = vmul.f32 0.015625, %v2704_v6  ;;  %v569_v46 = vadd.f32 %v553_v1, %v493_v28 }
  0x82   :  { %v705_v63 = vsel %vm662_vm0, %v660_v16, 0.0  ;;  %v2710_v29 = vadd.f32 %v629_v21, %v569_v46 }
  0x83   :  { %706 = vadd.xlane.f32.xlu0 %v705_v63 }
  0x84   :  { %v661_v61 = vmul.f32 0.015625, %v2710_v29 }
  0x86   :  { %v708_v45 = vsel %vm662_vm0, %v661_v61, 0.0 }
  0x87   :  { %709 = vadd.xlane.f32.xlu1 %v708_v45 }
  0xd2   :  { %v2714_v5 = vpop.xlane.xlu1 %679 }
  0xd3   :  { %v716_v33 = vmul.f32 %v2714_v5, %v2714_v5 }
  0xd6   :  { %v665_v57 = vpop.xlane.xlu0 %664 }
  0xd7   :  { %v711_v12 = vmul.f32 %v665_v57, %v665_v57 }
  0xd9   :  { %v2722_v23 = vpop.xlane.xlu1 %691 }
  0xda   :  { %v720_v56 = vmul.f32 %v2722_v23, %v2722_v23 }
  0xdd   :  { %v668_v25 = vpop.xlane.xlu0 %667 }
  0xde   :  { %v712_v35 = vmul.f32 %v668_v25, %v668_v25 }
  0xe0   :  { %v727_v31 = vadd.f32 %v712_v35, %v711_v12  ;;  %v2730_v43 = vpop.xlane.xlu1 %703 }
  0xe1   :  { %v724_v52 = vmul.f32 %v2730_v43, %v2730_v43 }
  0xe2   :  { %v728_v13 = vrot.slane %v727_v31, 4 }
  0xe4   :  { %v729_v9 = vadd.f32 %v728_v13, %v727_v31 }
  0xe5   :  { %v2716_v53 = vpop.xlane.xlu0 %676 }
  0xe6   :  { %v730_v0 = vrot.slane %v729_v9, 2  ;;  %v715_v49 = vmul.f32 %v2716_v53, %v2716_v53 }
  0xe8   :  { %v731_v37 = vadd.f32 %v730_v0, %v729_v9  ;;  %v741_v7 = vadd.f32 %v716_v33, %v715_v49 }
  0xea   :  { %v732_v54 = vrot.slane %v731_v37, 1  ;;  %v742_v55 = vrot.slane %v741_v7, 4 }
  0xeb   :  { %v2724_v58 = vpop.xlane.xlu0 %688 }
  0xec   :  { %v719_v4 = vmul.f32 %v2724_v58, %v2724_v58  ;;  %v733_v11 = vadd.f32 %v732_v54, %v731_v37  ;;  %v743_v8 = vadd.f32 %v742_v55, %v741_v7  ;;  %v3517_v37 = vld [vmem:[#allocation41_spill] sm:$0xff] }
  0xee   :  { %v755_v47 = vadd.f32 %v720_v56, %v719_v4  ;;  %1851 = vrsqrt.f32 %v733_v11  ;;  %v839_v17 = vadd.f32 1.0, %v733_v11  ;;  %v744_v39 = vrot.slane %v743_v8, 2 }
  0xef   :  { %vm785_vm1 = vcmp.eq.f32.partialorder %v733_v11, inf  ;;  %v788_v1 = vand.u32 2147483648, %v733_v11  ;;  %vm787_vm2 = vcmp.eq.f32.partialorder %v733_v11, 0.0 }
  0xf0   :  { %v756_v34 = vrot.slane %v755_v47, 4  ;;  %v745_v36 = vadd.f32 %v744_v39, %v743_v8  ;;  %1853 = vrcp.f32 %v839_v17 }
  0xf2   :  { %v757_v3 = vadd.f32 %v756_v34, %v755_v47  ;;  %v746_v19 = vrot.slane %v745_v36, 1 }
  0xf3   :  { %v2732_v18 = vpop.xlane.xlu1 %670 }
  0xf4   :  { %v758_v62 = vrot.slane %v757_v3, 2  ;;  %v747_v27 = vadd.f32 %v746_v19, %v745_v36  ;;  %v713_v63 = vmul.f32 %v2732_v18, %v2732_v18 }
  0xf6   :  { %v759_v32 = vadd.f32 %v758_v62, %v757_v3  ;;  %1855 = vrsqrt.f32 %v747_v27  ;;  %v841_v42 = vadd.f32 1.0, %v747_v27  ;;  %vm799_vm3 = vcmp.eq.f32.partialorder %v747_v27, inf }
  0xf7   :  { %vm801_vm4 = vcmp.eq.f32.partialorder %v747_v27, 0.0 }
  0xf8   :  { %v2734_v30 = vpop.xlane.xlu0 %700  ;;  %v1852_v14 = vpop.eup %1851  ;;  %v760_v40 = vrot.slane %v759_v32, 1  ;;  %1857 = vrcp.f32 %v841_v42 }
  0xf9   :  { %v723_v41 = vmul.f32 %v2734_v30, %v2734_v30  ;;  %v784_v26 = vmul.f32 %v1852_v14, %v733_v11 }
  0xfa   :  { %v2740_v38 = vadd.f32 %v760_v40, %v759_v32  ;;  %v1854_v16 = vpop.eup %1853 }
  0xfb   :  { %v769_v28 = vadd.f32 %v724_v52, %v723_v41  ;;  %v786_v2 = vsel %vm785_vm1, %v733_v11, %v784_v26  ;;  %v2742_v21 = vpop.xlane.xlu1 %673  ;;  %v802_v11 = vand.u32 2147483648, %v747_v27 }
  0xfc   :  { %v789_v46 = vsel %vm787_vm2, %v788_v1, %v786_v2  ;;  %1859 = vrsqrt.f32 %v2740_v38  ;;  %v843_v45 = vadd.f32 1.0, %v2740_v38  ;;  %v714_v35 = vmul.f32 %v2742_v21, %v2742_v21 }
  0xfd   :  { %v848_v61 = vmul.f32 %v1854_v16, %v789_v46  ;;  %v770_v12 = vrot.slane %v769_v28, 4  ;;  %vm813_vm5 = vcmp.eq.f32.partialorder %v2740_v38, inf  ;;  %v816_v1 = vand.u32 2147483648, %v2740_v38 }
  0xfe   :  { %1861 = vrcp.f32 %v843_v45  ;;  %v734_v0 = vadd.f32 %v714_v35, %v713_v63  ;;  %vm815_vm6 = vcmp.eq.f32.partialorder %v2740_v38, 0.0 }
  0xff   :  { %v2750_v31 = vpop.xlane.xlu0 %682  ;;  %v863_v13 = vmul.f32 %v848_v61, %v665_v57  ;;  %v864_v9 = vmul.f32 %v848_v61, %v668_v25  ;;  %v771_v33 = vadd.f32 %v770_v12, %v769_v28 }
 0x100   :  { %v1856_v49 = vpop.eup %1855  ;;  %v717_v56 = vmul.f32 %v2750_v31, %v2750_v31  ;;  %v735_v8 = vrot.slane %v734_v0, 4 }
 0x101   :  { %v879_v7 = vmul.f32 %v863_v13, %v3517_v37  ;;  %v880_v54 = vmul.f32 %v864_v9, %v2442_v22  ;;  %v772_v55 = vrot.slane %v771_v33, 2  ;;  %v798_v4 = vmul.f32 %v1856_v49, %v747_v27  ;;  %v3518_v13 = vld [vmem:[#allocation37_spill] sm:$0xff] }
 0x102   :  { %v2756_v47 = vpop.xlane.xlu1 %685  ;;  %v736_v3 = vadd.f32 %v735_v8, %v734_v0  ;;  %v1858_v19 = vpop.eup %1857 }
 0x103   :  { %v895_v57 = vsel %vm662_vm0, %v879_v7, 0.0  ;;  %v896_v25 = vsel %vm662_vm0, %v880_v54, 0.0  ;;  %v773_v17 = vadd.f32 %v772_v55, %v771_v33  ;;  %v718_v39 = vmul.f32 %v2756_v47, %v2756_v47 }
 0x104   :  { %v897_v34 = vadd.f32 %v896_v25, %v895_v57  ;;  %v800_v36 = vsel %vm799_vm3, %v747_v27, %v798_v4  ;;  %v737_v41 = vrot.slane %v736_v3, 2 }
 0x105   :  { %v803_v62 = vsel %vm801_vm4, %v802_v11, %v800_v36  ;;  %v774_v32 = vrot.slane %v773_v17, 1  ;;  %v748_v14 = vadd.f32 %v718_v39, %v717_v56 }
 0x106   :  { %v1860_v52 = vpop.eup %1859  ;;  %v898_v42 = vrot.slane %v897_v34, 4  ;;  %v852_v40 = vmul.f32 %v1858_v19, %v803_v62  ;;  %v738_v61 = vadd.f32 %v737_v41, %v736_v3  ;;  %v3519_v3 = vld [vmem:[#allocation46_spill] sm:$0xff] }
 0x107   :  { %v812_v26 = vmul.f32 %v1860_v52, %v2740_v38  ;;  %v2765_v28 = vadd.f32 %v774_v32, %v773_v17  ;;  %v749_v2 = vrot.slane %v748_v14, 4  ;;  %v2767_v16 = vpop.xlane.xlu0 %694 }
 0x108   :  { %v899_v27 = vadd.f32 %v898_v42, %v897_v34  ;;  %v867_v46 = vmul.f32 %v852_v40, %v2716_v53  ;;  %v868_v63 = vmul.f32 %v852_v40, %v2714_v5  ;;  %v1862_v12 = vpop.eup %1861  ;;  %v721_v0 = vmul.f32 %v2767_v16, %v2767_v16 }
 0x109   :  { %v814_v45 = vsel %vm813_vm5, %v2740_v38, %v812_v26  ;;  %1863 = vrsqrt.f32 %v2765_v28  ;;  %v845_v53 = vadd.f32 1.0, %v2765_v28  ;;  %v739_v5 = vrot.slane %v738_v61, 1 }
 0x10a   :  { %v883_v35 = vmul.f32 %v867_v46, %v2496_v24  ;;  %v884_v9 = vmul.f32 %v868_v63, %v3518_v13  ;;  %v817_v33 = vsel %vm815_vm6, %v816_v1, %v814_v45  ;;  %v750_v7 = vadd.f32 %v749_v2, %v748_v14 }
 0x10b   :  { %v856_v49 = vmul.f32 %v1862_v12, %v817_v33  ;;  %v900_v4 = vrot.slane %v899_v27, 2  ;;  %1865 = vrcp.f32 %v845_v53  ;;  %v2787_v25 = vadd.f32 %v739_v5, %v738_v61 }
 0x10c   :  { %v2779_v54 = vpop.xlane.xlu1 %697  ;;  %v913_v38 = vsel %vm662_vm0, %v883_v35, 0.0  ;;  %v914_v55 = vsel %vm662_vm0, %v884_v9, 0.0  ;;  %v751_v17 = vrot.slane %v750_v7, 2  ;;  %vm827_vm7 = vcmp.eq.f32.partialorder %v2765_v28, inf }
 0x10d   :  { %v722_v56 = vmul.f32 %v2779_v54, %v2779_v54  ;;  %v915_v11 = vadd.f32 %v914_v55, %v913_v38  ;;  %v871_v8 = vmul.f32 %v856_v49, %v2724_v58  ;;  %v872_v57 = vmul.f32 %v856_v49, %v2722_v23 }
 0x10e   :  { %v901_v62 = vadd.f32 %v900_v4, %v899_v27  ;;  %1867 = vrsqrt.f32 %v2787_v25  ;;  %v840_v52 = vadd.f32 1.0, %v2787_v25  ;;  %vm829_vm8 = vcmp.eq.f32.partialorder %v2765_v28, 0.0 }
 0x10f   :  { %v762_v39 = vadd.f32 %v722_v56, %v721_v0  ;;  %v916_v34 = vrot.slane %v915_v11, 4  ;;  %v887_v36 = vmul.f32 %v871_v8, %v2542_v60  ;;  %v888_v19 = vmul.f32 %v872_v57, %v3519_v3 }
 0x110   :  { %v2793_v32 = vpop.xlane.xlu0 %706  ;;  %v752_v40 = vadd.f32 %v751_v17, %v750_v7  ;;  %1869 = vrcp.f32 %v840_v52  ;;  %v902_v2 = vrot.slane %v901_v62, 1  ;;  %v830_v35 = vand.u32 2147483648, %v2765_v28 }
 0x111   :  { %v917_v58 = vadd.f32 %v916_v34, %v915_v11  ;;  %v931_v23 = vsel %vm662_vm0, %v887_v36, 0.0  ;;  %v932_v14 = vsel %vm662_vm0, %v888_v19, 0.0  ;;  %v763_v41 = vrot.slane %v762_v39, 4 }
 0x112   :  { %v933_v42 = vadd.f32 %v932_v14, %v931_v23  ;;  %v725_v1 = vmul.f32 %v2793_v32, %v2793_v32  ;;  %v753_v61 = vrot.slane %v752_v40, 1  ;;  %v2807_v33 = vadd.f32 %v902_v2, %v901_v62 }
 0x113   :  { %v1864_v26 = vpop.eup %1863  ;;  %v918_v27 = vrot.slane %v917_v58, 2  ;;  %v764_v45 = vadd.f32 %v763_v41, %v762_v39  ;;  %vm792_vm9 = vcmp.eq.f32.partialorder %v2787_v25, inf  ;;  %v795_v57 = vand.u32 2147483648, %v2787_v25 }
 0x114   :  { %v934_v46 = vrot.slane %v933_v42, 4  ;;  %v826_v63 = vmul.f32 %v1864_v26, %v2765_v28  ;;  %v2802_v12 = vpop.xlane.xlu1 %709  ;;  %v2812_v5 = vadd.f32 %v753_v61, %v752_v40  ;;  %v975_v4 = vsel %vm662_vm0, %v2807_v33, -inf }
 0x115   :  { %v726_v9 = vmul.f32 %v2802_v12, %v2802_v12  ;;  %v919_v0 = vadd.f32 %v918_v27, %v917_v58  ;;  %v765_v7 = vrot.slane %v764_v45, 2  ;;  %v1866_v38 = vpop.eup %1865  ;;  %976 = vmax.xlane.f32.xlu0 %v975_v4  ;;  %vm794_vm10 = vcmp.eq.f32.partialorder %v2787_v25, 0.0 }
 0x116   :  { %v935_v49 = vadd.f32 %v934_v46, %v933_v42  ;;  %v828_v53 = vsel %vm827_vm7, %v2765_v28, %v826_v63  ;;  %1871 = vrsqrt.f32 %v2812_v5  ;;  %v842_v17 = vadd.f32 1.0, %v2812_v5 }
 0x117   :  { %v831_v55 = vsel %vm829_vm8, %v830_v35, %v828_v53  ;;  %v776_v56 = vadd.f32 %v726_v9, %v725_v1  ;;  %v920_v11 = vrot.slane %v919_v0, 1  ;;  %v766_v39 = vadd.f32 %v765_v7, %v764_v45 }
 0x118   :  { %v860_v8 = vmul.f32 %v1866_v38, %v831_v55  ;;  %v1868_v36 = vpop.eup %1867  ;;  %v936_v58 = vrot.slane %v935_v49, 2  ;;  %1873 = vrcp.f32 %v842_v17  ;;  %vm806_vm11 = vcmp.eq.f32.partialorder %v2812_v5, inf }
 0x119   :  { %v777_v34 = vrot.slane %v776_v56, 4  ;;  %v2824_v62 = vadd.f32 %v920_v11, %v919_v0  ;;  %v791_v23 = vmul.f32 %v1868_v36, %v2787_v25  ;;  %v767_v14 = vrot.slane %v766_v39, 1 }
 0x11a   :  { %v875_v28 = vmul.f32 %v860_v8, %v2734_v30  ;;  %v876_v19 = vmul.f32 %v860_v8, %v2730_v43  ;;  %v937_v26 = vadd.f32 %v936_v58, %v935_v49  ;;  %v1870_v1 = vpop.eup %1869  ;;  %vm808_vm12 = vcmp.eq.f32.partialorder %v2812_v5, 0.0 }
 0x11b   :  { %v778_v52 = vadd.f32 %v777_v34, %v776_v56  ;;  %v981_v41 = vsel %vm662_vm0, %v2824_v62, -inf  ;;  %v793_v43 = vsel %vm792_vm9, %v2787_v25, %v791_v23  ;;  %v768_v30 = vadd.f32 %v767_v14, %v766_v39 }
 0x11c   :  { %v891_v42 = vmul.f32 %v875_v28, %v2608_v50  ;;  %v892_v40 = vmul.f32 %v876_v19, %v2455_v44  ;;  %982 = vmax.xlane.f32.xlu0 %v981_v41  ;;  %v796_v63 = vsel %vm794_vm10, %v795_v57, %v793_v43  ;;  %v938_v61 = vrot.slane %v937_v26, 1 }
 0x11d   :  { %v779_v2 = vrot.slane %v778_v52, 2  ;;  %v850_v35 = vmul.f32 %v1870_v1, %v796_v63  ;;  %1875 = vrsqrt.f32 %v768_v30  ;;  %v844_v9 = vadd.f32 1.0, %v768_v30 }
 0x11e   :  { %v949_v27 = vsel %vm662_vm0, %v891_v42, 0.0  ;;  %v950_v46 = vsel %vm662_vm0, %v892_v40, 0.0  ;;  %v2839_v25 = vadd.f32 %v938_v61, %v937_v26  ;;  %vm820_vm13 = vcmp.eq.f32.partialorder %v768_v30, inf }
 0x11f   :  { %v951_v45 = vadd.f32 %v950_v46, %v949_v27  ;;  %v780_v0 = vadd.f32 %v779_v2, %v778_v52  ;;  %v865_v53 = vmul.f32 %v850_v35, %v2732_v18  ;;  %v866_v7 = vmul.f32 %v850_v35, %v2742_v21 }
 0x120   :  { %v1872_v38 = vpop.eup %1871  ;;  %1877 = vrcp.f32 %v844_v9  ;;  %v809_v18 = vand.u32 2147483648, %v2812_v5  ;;  %v987_v21 = vsel %vm662_vm0, %v2839_v25, -inf  ;;  %v823_v46 = vand.u32 2147483648, %v768_v30 }
 0x121   :  { %v952_v49 = vrot.slane %v951_v45, 4  ;;  %v781_v55 = vrot.slane %v780_v0, 1  ;;  %v881_v4 = vmul.f32 %v865_v53, %v2582_v10  ;;  %v882_v11 = vmul.f32 %v866_v7, %v2626_v48  ;;  %988 = vmax.xlane.f32.xlu0 %v987_v21 }
 0x122   :  { %v805_v8 = vmul.f32 %v1872_v38, %v2812_v5  ;;  %v1874_v17 = vpop.eup %1873  ;;  %vm822_vm14 = vcmp.eq.f32.partialorder %v768_v30, 0.0 }
 0x123   :  { %v953_v56 = vadd.f32 %v952_v49, %v951_v45  ;;  %v782_v57 = vadd.f32 %v781_v55, %v780_v0  ;;  %v904_v39 = vsel %vm662_vm0, %v881_v4, 0.0  ;;  %v905_v34 = vsel %vm662_vm0, %v882_v11, 0.0 }
 0x124   :  { %v807_v36 = vsel %vm806_vm11, %v2812_v5, %v805_v8  ;;  %v906_v19 = vadd.f32 %v905_v34, %v904_v39 }
 0x125   :  { %v954_v28 = vrot.slane %v953_v56, 2  ;;  %v810_v58 = vsel %vm808_vm12, %v809_v18, %v807_v36  ;;  %1879 = vrsqrt.f32 %v782_v57  ;;  %v846_v14 = vadd.f32 1.0, %v782_v57 }
 0x126   :  { %v854_v23 = vmul.f32 %v1874_v17, %v810_v58  ;;  %v907_v52 = vrot.slane %v906_v19, 4  ;;  %vm834_vm15 = vcmp.eq.f32.partialorder %v782_v57, inf  ;;  %v837_v8 = vand.u32 2147483648, %v782_v57 }
 0x127   :  { %v955_v42 = vadd.f32 %v954_v28, %v953_v56  ;;  %v1876_v40 = vpop.eup %1875  ;;  %1881 = vrcp.f32 %v846_v14  ;;  %vm836_vm1 = vcmp.eq.f32.partialorder %v782_v57, 0.0 }
 0x128   :  { %v869_v41 = vmul.f32 %v854_v23, %v2750_v31  ;;  %v870_v26 = vmul.f32 %v854_v23, %v2756_v47  ;;  %v908_v1 = vadd.f32 %v907_v52, %v906_v19  ;;  %v819_v43 = vmul.f32 %v1876_v40, %v768_v30 }
 0x129   :  { %v956_v2 = vrot.slane %v955_v42, 1 }
 0x12a   :  { %v885_v5 = vmul.f32 %v869_v41, %v2641_v20  ;;  %v886_v27 = vmul.f32 %v870_v26, %v2660_v51  ;;  %v1878_v63 = vpop.eup %1877  ;;  %v821_v61 = vsel %vm820_vm13, %v768_v30, %v819_v43  ;;  %v909_v35 = vrot.slane %v908_v1, 2 }
 0x12b   :  { %v2856_v45 = vadd.f32 %v956_v2, %v955_v42  ;;  %v824_v9 = vsel %vm822_vm14, %v823_v46, %v821_v61 }
 0x12c   :  { %v922_v31 = vsel %vm662_vm0, %v885_v5, 0.0  ;;  %v923_v47 = vsel %vm662_vm0, %v886_v27, 0.0  ;;  %v858_v49 = vmul.f32 %v1878_v63, %v824_v9  ;;  %v910_v7 = vadd.f32 %v909_v35, %v908_v1 }
 0x12d   :  { %v924_v0 = vadd.f32 %v923_v47, %v922_v31  ;;  %v993_v53 = vsel %vm662_vm0, %v2856_v45, -inf }
 0x12e   :  { %994 = vmax.xlane.f32.xlu0 %v993_v53  ;;  %v873_v56 = vmul.f32 %v858_v49, %v2767_v16  ;;  %v874_v30 = vmul.f32 %v858_v49, %v2779_v54  ;;  %v911_v4 = vrot.slane %v910_v7, 1 }
 0x12f   :  { %v1880_v38 = vpop.eup %1879  ;;  %v925_v55 = vrot.slane %v924_v0, 4 }
 0x130   :  { %v833_v11 = vmul.f32 %v1880_v38, %v782_v57  ;;  %v889_v21 = vmul.f32 %v873_v56, %v2676_v59  ;;  %v890_v17 = vmul.f32 %v874_v30, %v2694_v15  ;;  %v2866_v39 = vadd.f32 %v911_v4, %v910_v7 }
 0x131   :  { %v926_v18 = vadd.f32 %v925_v55, %v924_v0  ;;  %v1882_v36 = vpop.eup %1881 }
 0x132   :  { %v835_v34 = vsel %vm834_vm15, %v782_v57, %v833_v11  ;;  %v940_v28 = vsel %vm662_vm0, %v889_v21, 0.0  ;;  %v941_v16 = vsel %vm662_vm0, %v890_v17, 0.0  ;;  %v978_v54 = vsel %vm662_vm0, %v2866_v39, -inf }
 0x133   :  { %v838_v19 = vsel %vm836_vm1, %v837_v8, %v835_v34  ;;  %v942_v58 = vadd.f32 %v941_v16, %v940_v28  ;;  %979 = vmax.xlane.f32.xlu1 %v978_v54  ;;  %v927_v14 = vrot.slane %v926_v18, 2 }
 0x134   :  { %v862_v23 = vmul.f32 %v1882_v36, %v838_v19 }
 0x135   :  { %v943_v52 = vrot.slane %v942_v58, 4  ;;  %v928_v41 = vadd.f32 %v927_v14, %v926_v18 }
 0x136   :  { %v877_v42 = vmul.f32 %v862_v23, %v2793_v32  ;;  %v878_v40 = vmul.f32 %v862_v23, %v2802_v12 }
 0x137   :  { %v944_v57 = vadd.f32 %v943_v52, %v942_v58  ;;  %v929_v43 = vrot.slane %v928_v41, 1 }
 0x138   :  { %v893_v26 = vmul.f32 %v877_v42, %v2704_v6  ;;  %v894_v1 = vmul.f32 %v878_v40, %v2710_v29 }
 0x139   :  { %v2878_v27 = vadd.f32 %v929_v43, %v928_v41  ;;  %v945_v46 = vrot.slane %v944_v57, 2 }
 0x13a   :  { %v958_v2 = vsel %vm662_vm0, %v893_v26, 0.0  ;;  %v959_v5 = vsel %vm662_vm0, %v894_v1, 0.0 }
 0x13b   :  { %v960_v63 = vadd.f32 %v959_v5, %v958_v2  ;;  %v984_v32 = vsel %vm662_vm0, %v2878_v27, -inf  ;;  %v946_v61 = vadd.f32 %v945_v46, %v944_v57 }
 0x13c   :  { %985 = vmax.xlane.f32.xlu1 %v984_v32 }
 0x13d   :  { %v961_v12 = vrot.slane %v960_v63, 4  ;;  %v947_v35 = vrot.slane %v946_v61, 1 }
 0x13f   :  { %v962_v31 = vadd.f32 %v961_v12, %v960_v63  ;;  %v2882_v47 = vadd.f32 %v947_v35, %v946_v61 }
 0x141   :  { %v963_v9 = vrot.slane %v962_v31, 2  ;;  %v990_v0 = vsel %vm662_vm0, %v2882_v47, -inf }
 0x142   :  { %991 = vmax.xlane.f32.xlu1 %v990_v0 }
 0x143   :  { %v964_v49 = vadd.f32 %v963_v9, %v962_v31 }
 0x145   :  { %v965_v53 = vrot.slane %v964_v49, 1 }
 0x147   :  { %v2886_v7 = vadd.f32 %v965_v53, %v964_v49 }
 0x149   :  { %v996_v38 = vsel %vm662_vm0, %v2886_v7, -inf }
 0x14a   :  { %997 = vmax.xlane.f32.xlu1 %v996_v38 }
 0x1a2   :  { %v977_v55 = vpop.xlane.xlu0 %976 }
 0x1a3   :  { %v999_v56 = vsub.f32 %v2807_v33, %v977_v55 }
 0x1a5   :  { %v1007_v30 = vmul.f32 1.442695, %v999_v56 }
 0x1a7   :  { %1883 = vpow2.f32 %v1007_v30 }
 0x1a9   :  { %v983_v4 = vpop.xlane.xlu0 %982 }
 0x1aa   :  { %v1001_v11 = vsub.f32 %v2824_v62, %v983_v4 }
 0x1ac   :  { %v1011_v8 = vmul.f32 1.442695, %v1001_v11 }
 0x1ae   :  { %1885 = vpow2.f32 %v1011_v8  ;;  %v989_v18 = vpop.xlane.xlu0 %988 }
 0x1af   :  { %v1003_v21 = vsub.f32 %v2839_v25, %v989_v18 }
 0x1b1   :  { %v1884_v17 = vpop.eup %1883  ;;  %v1015_v34 = vmul.f32 1.442695, %v1003_v21 }
 0x1b2   :  { %v1023_v36 = vsel %vm662_vm0, %v1884_v17, 0.0 }
 0x1b3   :  { %1024 = vadd.xlane.f32.xlu0 %v1023_v36  ;;  %1887 = vpow2.f32 %v1015_v34 }
 0x1b8   :  { %v1886_v28 = vpop.eup %1885 }
 0x1b9   :  { %v1029_v16 = vsel %vm662_vm0, %v1886_v28, 0.0 }
 0x1ba   :  { %1030 = vadd.xlane.f32.xlu0 %v1029_v16 }
 0x1bb   :  { %v995_v19 = vpop.xlane.xlu0 %994 }
 0x1bc   :  { %v1005_v54 = vsub.f32 %v2856_v45, %v995_v19 }
 0x1bd   :  { %v1888_v23 = vpop.eup %1887 }
 0x1be   :  { %v1019_v58 = vmul.f32 1.442695, %v1005_v54  ;;  %v1035_v52 = vsel %vm662_vm0, %v1888_v23, 0.0 }
 0x1bf   :  { %1036 = vadd.xlane.f32.xlu0 %v1035_v52 }
 0x1c0   :  { %1889 = vpow2.f32 %v1019_v58  ;;  %v980_v14 = vpop.xlane.xlu1 %979 }
 0x1c1   :  { %v1000_v42 = vsub.f32 %v2866_v39, %v980_v14 }
 0x1c3   :  { %v1009_v40 = vmul.f32 1.442695, %v1000_v42 }
 0x1c5   :  { %1891 = vpow2.f32 %v1009_v40 }
 0x1c9   :  { %v986_v57 = vpop.xlane.xlu1 %985 }
 0x1ca   :  { %v1890_v41 = vpop.eup %1889  ;;  %v1002_v26 = vsub.f32 %v2878_v27, %v986_v57 }
 0x1cb   :  { %v1041_v1 = vsel %vm662_vm0, %v1890_v41, 0.0 }
 0x1cc   :  { %1042 = vadd.xlane.f32.xlu0 %v1041_v1  ;;  %v1013_v43 = vmul.f32 1.442695, %v1002_v26 }
 0x1ce   :  { %1893 = vpow2.f32 %v1013_v43 }
 0x1cf   :  { %v2900_v2 = vpop.eup %1891  ;;  %v992_v5 = vpop.xlane.xlu1 %991 }
 0x1d0   :  { %v1004_v46 = vsub.f32 %v2882_v47, %v992_v5  ;;  %v1026_v63 = vsel %vm662_vm0, %v2900_v2, 0.0 }
 0x1d1   :  { %1027 = vadd.xlane.f32.xlu1 %v1026_v63 }
 0x1d2   :  { %v1017_v32 = vmul.f32 1.442695, %v1004_v46 }
 0x1d4   :  { %1895 = vpow2.f32 %v1017_v32 }
 0x1d7   :  { %v998_v61 = vpop.xlane.xlu1 %997 }
 0x1d8   :  { %v1006_v12 = vsub.f32 %v2886_v7, %v998_v61  ;;  %v2906_v35 = vpop.eup %1893 }
 0x1d9   :  { %v1032_v9 = vsel %vm662_vm0, %v2906_v35, 0.0 }
 0x1da   :  { %v1021_v31 = vmul.f32 1.442695, %v1006_v12  ;;  %1033 = vadd.xlane.f32.xlu1 %v1032_v9 }
 0x1dc   :  { %1897 = vpow2.f32 %v1021_v31 }
 0x1de   :  { %v2910_v0 = vpop.eup %1895 }
 0x1df   :  { %v1038_v49 = vsel %vm662_vm0, %v2910_v0, 0.0 }
 0x1e0   :  { %1039 = vadd.xlane.f32.xlu1 %v1038_v49 }
 0x1e6   :  { %v2914_v53 = vpop.eup %1897 }
 0x1e7   :  { %v1044_v38 = vsel %vm662_vm0, %v2914_v53, 0.0 }
 0x1e8   :  { %1045 = vadd.xlane.f32.xlu1 %v1044_v38 }
 0x240   :  { %v1025_v55 = vpop.xlane.xlu0 %1024 }
 0x241   :  { %1899 = vrcp.f32 %v1025_v55 }
 0x247   :  { %v1031_v56 = vpop.xlane.xlu0 %1030 }
 0x248   :  { %1901 = vrcp.f32 %v1031_v56 }
 0x24b   :  { %v1900_v30 = vpop.eup %1899 }
 0x24c   :  { %v1048_v4 = vmul.f32 %v1900_v30, %v1884_v17  ;;  %v1037_v11 = vpop.xlane.xlu0 %1036 }
 0x24d   :  { %1903 = vrcp.f32 %v1037_v11 }
 0x24e   :  { %v1063_v8 = vmul.f32 %v1048_v4, %v3517_v37  ;;  %v1064_v18 = vmul.f32 %v1048_v4, %v2442_v22 }
 0x250   :  { %v1079_v34 = vsel %vm662_vm0, %v1063_v8, 0.0  ;;  %v1082_v36 = vsel %vm662_vm0, %v1064_v18, 0.0 }
 0x251   :  { %1080 = vadd.xlane.f32.xlu0 %v1079_v34  ;;  %1083 = vadd.xlane.f32.xlu1 %v1082_v36 }
 0x252   :  { %v1902_v21 = vpop.eup %1901 }
 0x253   :  { %v1052_v16 = vmul.f32 %v1902_v21, %v1886_v28 }
 0x255   :  { %v1067_v19 = vmul.f32 %v1052_v16, %v2496_v24  ;;  %v1068_v54 = vmul.f32 %v1052_v16, %v3518_v13 }
 0x257   :  { %v1091_v17 = vsel %vm662_vm0, %v1067_v19, 0.0  ;;  %v1094_v58 = vsel %vm662_vm0, %v1068_v54, 0.0  ;;  %v1904_v52 = vpop.eup %1903 }
 0x258   :  { %1092 = vadd.xlane.f32.xlu0 %v1091_v17  ;;  %1095 = vadd.xlane.f32.xlu1 %v1094_v58  ;;  %v1056_v42 = vmul.f32 %v1904_v52, %v1888_v23 }
 0x259   :  { %v1043_v14 = vpop.xlane.xlu0 %1042 }
 0x25a   :  { %1905 = vrcp.f32 %v1043_v14  ;;  %v1071_v40 = vmul.f32 %v1056_v42, %v2542_v60  ;;  %v1072_v57 = vmul.f32 %v1056_v42, %v3519_v3 }
 0x25c   :  { %v1103_v28 = vsel %vm662_vm0, %v1071_v40, 0.0  ;;  %v1106_v1 = vsel %vm662_vm0, %v1072_v57, 0.0 }
 0x25d   :  { %1104 = vadd.xlane.f32.xlu0 %v1103_v28  ;;  %1107 = vadd.xlane.f32.xlu1 %v1106_v1 }
 0x25e   :  { %v1028_v26 = vpop.xlane.xlu1 %1027 }
 0x25f   :  { %1907 = vrcp.f32 %v1028_v26 }
 0x264   :  { %v1906_v43 = vpop.eup %1905 }
 0x265   :  { %v1060_v5 = vmul.f32 %v1906_v43, %v1890_v41 }
 0x267   :  { %v1075_v46 = vmul.f32 %v1060_v5, %v2608_v50  ;;  %v1076_v63 = vmul.f32 %v1060_v5, %v2455_v44  ;;  %v1034_v32 = vpop.xlane.xlu1 %1033 }
 0x268   :  { %1909 = vrcp.f32 %v1034_v32 }
 0x269   :  { %v1115_v23 = vsel %vm662_vm0, %v1075_v46, 0.0  ;;  %v1118_v61 = vsel %vm662_vm0, %v1076_v63, 0.0  ;;  %v1908_v12 = vpop.eup %1907 }
 0x26a   :  { %1116 = vadd.xlane.f32.xlu0 %v1115_v23  ;;  %1119 = vadd.xlane.f32.xlu1 %v1118_v61  ;;  %v1050_v31 = vmul.f32 %v1908_v12, %v2900_v2 }
 0x26c   :  { %v1066_v9 = vmul.f32 %v1050_v31, %v2626_v48  ;;  %v1065_v49 = vmul.f32 %v1050_v31, %v2582_v10 }
 0x26d   :  { %v1040_v41 = vpop.xlane.xlu1 %1039 }
 0x26e   :  { %1911 = vrcp.f32 %v1040_v41  ;;  %v1088_v38 = vsel %vm662_vm0, %v1066_v9, 0.0  ;;  %v1085_v55 = vsel %vm662_vm0, %v1065_v49, 0.0 }
 0x26f   :  { %1089 = vadd.xlane.f32.xlu1 %v1088_v38  ;;  %1086 = vadd.xlane.f32.xlu0 %v1085_v55 }
 0x272   :  { %v1910_v56 = vpop.eup %1909 }
 0x273   :  { %v1054_v30 = vmul.f32 %v1910_v56, %v2906_v35 }
 0x275   :  { %v1046_v4 = vpop.xlane.xlu1 %1045  ;;  %v1070_v11 = vmul.f32 %v1054_v30, %v2660_v51  ;;  %v1069_v2 = vmul.f32 %v1054_v30, %v2641_v20 }
 0x276   :  { %1913 = vrcp.f32 %v1046_v4 }
 0x277   :  { %v1100_v8 = vsel %vm662_vm0, %v1070_v11, 0.0  ;;  %v1097_v18 = vsel %vm662_vm0, %v1069_v2, 0.0 }
 0x278   :  { %v1912_v21 = vpop.eup %1911  ;;  %1101 = vadd.xlane.f32.xlu1 %v1100_v8  ;;  %1098 = vadd.xlane.f32.xlu0 %v1097_v18 }
 0x279   :  { %v1058_v34 = vmul.f32 %v1912_v21, %v2910_v0 }
 0x27b   :  { %v1074_v36 = vmul.f32 %v1058_v34, %v2694_v15  ;;  %v1073_v16 = vmul.f32 %v1058_v34, %v2676_v59 }
 0x27d   :  { %v1112_v35 = vsel %vm662_vm0, %v1074_v36, 0.0  ;;  %v1109_v19 = vsel %vm662_vm0, %v1073_v16, 0.0 }
 0x27e   :  { %1113 = vadd.xlane.f32.xlu1 %v1112_v35  ;;  %1110 = vadd.xlane.f32.xlu0 %v1109_v19 }
 0x280   :  { %v1914_v54 = vpop.eup %1913 }
 0x281   :  { %v1062_v17 = vmul.f32 %v1914_v54, %v2914_v53 }
 0x283   :  { %v1078_v58 = vmul.f32 %v1062_v17, %v2710_v29  ;;  %v1077_v14 = vmul.f32 %v1062_v17, %v2704_v6 }
 0x285   :  { %v1124_v52 = vsel %vm662_vm0, %v1078_v58, 0.0  ;;  %v1121_v0 = vsel %vm662_vm0, %v1077_v14, 0.0 }
 0x286   :  { %1125 = vadd.xlane.f32.xlu1 %v1124_v52  ;;  %1122 = vadd.xlane.f32.xlu0 %v1121_v0 }
 0x2de   :  { %v2954_v42 = vpop.xlane.xlu0 %1080  ;;  %v2956_v40 = vpop.xlane.xlu1 %1083 }
 0x2df   :  { %v1127_v57 = vmul.f32 %v2954_v42, %v2954_v42  ;;  %v1128_v53 = vmul.f32 %v2956_v40, %v2956_v40 }
 0x2e1   :  { %v1143_v26 = vadd.f32 %v1128_v53, %v1127_v57 }
 0x2e3   :  { %v1144_v28 = vrot.slane %v1143_v26, 4 }
 0x2e5   :  { %v2962_v1 = vpop.xlane.xlu0 %1092  ;;  %v2964_v43 = vpop.xlane.xlu1 %1095  ;;  %v1145_v63 = vadd.f32 %v1144_v28, %v1143_v26 }
 0x2e6   :  { %v1131_v5 = vmul.f32 %v2962_v1, %v2962_v1  ;;  %v1132_v46 = vmul.f32 %v2964_v43, %v2964_v43 }
 0x2e7   :  { %v1146_v23 = vrot.slane %v1145_v63, 2 }
 0x2e8   :  { %v1157_v32 = vadd.f32 %v1132_v46, %v1131_v5 }
 0x2e9   :  { %v1147_v12 = vadd.f32 %v1146_v23, %v1145_v63 }
 0x2ea   :  { %v1158_v61 = vrot.slane %v1157_v32, 4  ;;  %v2970_v49 = vpop.xlane.xlu0 %1104  ;;  %v2972_v41 = vpop.xlane.xlu1 %1107 }
 0x2eb   :  { %v1148_v9 = vrot.slane %v1147_v12, 1  ;;  %v1135_v55 = vmul.f32 %v2970_v49, %v2970_v49  ;;  %v1136_v56 = vmul.f32 %v2972_v41, %v2972_v41 }
 0x2ec   :  { %v1159_v31 = vadd.f32 %v1158_v61, %v1157_v32 }
 0x2ed   :  { %v1149_v30 = vadd.f32 %v1148_v9, %v1147_v12  ;;  %v1171_v11 = vadd.f32 %v1136_v56, %v1135_v55 }
 0x2ee   :  { %v1160_v38 = vrot.slane %v1159_v31, 2 }
 0x2ef   :  { %1915 = vrsqrt.f32 %v1149_v30  ;;  %v1255_v2 = vadd.f32 1.0, %v1149_v30  ;;  %v1172_v18 = vrot.slane %v1171_v11, 4  ;;  %vm1201_vm2 = vcmp.eq.f32.partialorder %v1149_v30, inf }
 0x2f0   :  { %v1161_v4 = vadd.f32 %v1160_v38, %v1159_v31  ;;  %vm1203_vm3 = vcmp.eq.f32.partialorder %v1149_v30, 0.0  ;;  %v1204_v26 = vand.u32 2147483648, %v1149_v30 }
 0x2f1   :  { %v1173_v34 = vadd.f32 %v1172_v18, %v1171_v11  ;;  %1917 = vrcp.f32 %v1255_v2 }
 0x2f2   :  { %v1162_v8 = vrot.slane %v1161_v4, 1 }
 0x2f3   :  { %v1174_v16 = vrot.slane %v1173_v34, 2 }
 0x2f4   :  { %v1163_v21 = vadd.f32 %v1162_v8, %v1161_v4 }
 0x2f5   :  { %v1175_v58 = vadd.f32 %v1174_v16, %v1173_v34 }
 0x2f6   :  { %1919 = vrsqrt.f32 %v1163_v21  ;;  %v1257_v36 = vadd.f32 1.0, %v1163_v21  ;;  %vm1215_vm4 = vcmp.eq.f32.partialorder %v1163_v21, inf  ;;  %v1218_v8 = vand.u32 2147483648, %v1163_v21 }
 0x2f7   :  { %v2978_v35 = vpop.xlane.xlu0 %1116  ;;  %v2980_v19 = vpop.xlane.xlu1 %1119  ;;  %v1176_v0 = vrot.slane %v1175_v58, 1  ;;  %vm1217_vm5 = vcmp.eq.f32.partialorder %v1163_v21, 0.0 }
 0x2f8   :  { %v1139_v54 = vmul.f32 %v2978_v35, %v2978_v35  ;;  %v1140_v17 = vmul.f32 %v2980_v19, %v2980_v19  ;;  %1921 = vrcp.f32 %v1257_v36 }
 0x2f9   :  { %v1916_v52 = vpop.eup %1915  ;;  %v2986_v28 = vadd.f32 %v1176_v0, %v1175_v58 }
 0x2fa   :  { %v1185_v14 = vadd.f32 %v1140_v17, %v1139_v54  ;;  %v1200_v57 = vmul.f32 %v1916_v52, %v1149_v30 }
 0x2fb   :  { %v1918_v12 = vpop.eup %1917  ;;  %1923 = vrsqrt.f32 %v2986_v28  ;;  %v1259_v55 = vadd.f32 1.0, %v2986_v28  ;;  %vm1229_vm6 = vcmp.eq.f32.partialorder %v2986_v28, inf  ;;  %vm1231_vm7 = vcmp.eq.f32.partialorder %v2986_v28, 0.0 }
 0x2fc   :  { %v1186_v53 = vrot.slane %v1185_v14, 4  ;;  %v2988_v5 = vpop.xlane.xlu0 %1086  ;;  %v2990_v46 = vpop.xlane.xlu1 %1089  ;;  %v1202_v63 = vsel %vm1201_vm2, %v1149_v30, %v1200_v57 }
 0x2fd   :  { %v1129_v23 = vmul.f32 %v2988_v5, %v2988_v5  ;;  %v1130_v61 = vmul.f32 %v2990_v46, %v2990_v46  ;;  %v1205_v31 = vsel %vm1203_vm3, %v1204_v26, %v1202_v63  ;;  %1925 = vrcp.f32 %v1259_v55 }
 0x2fe   :  { %v1187_v32 = vadd.f32 %v1186_v53, %v1185_v14  ;;  %v1264_v38 = vmul.f32 %v1918_v12, %v1205_v31 }
 0x2ff   :  { %v1150_v11 = vadd.f32 %v1130_v61, %v1129_v23  ;;  %v1232_v61 = vand.u32 2147483648, %v2986_v28 }
 0x300   :  { %v1920_v9 = vpop.eup %1919  ;;  %v1188_v56 = vrot.slane %v1187_v32, 2  ;;  %v1279_v30 = vmul.f32 %v1264_v38, %v2954_v42  ;;  %v1280_v2 = vmul.f32 %v1264_v38, %v2956_v40 }
 0x301   :  { %v1214_v4 = vmul.f32 %v1920_v9, %v1163_v21  ;;  %v1151_v36 = vrot.slane %v1150_v11, 4 }
 0x302   :  { %v1189_v18 = vadd.f32 %v1188_v56, %v1187_v32  ;;  %v1922_v16 = vpop.eup %1921  ;;  %v1295_v54 = vmul.f32 %v1279_v30, %v3517_v37  ;;  %v1296_v17 = vmul.f32 %v1280_v2, %v2442_v22 }
 0x303   :  { %v1216_v34 = vsel %vm1215_vm4, %v1163_v21, %v1214_v4  ;;  %v1152_v0 = vadd.f32 %v1151_v36, %v1150_v11 }
 0x304   :  { %v1219_v58 = vsel %vm1217_vm5, %v1218_v8, %v1216_v34  ;;  %v1190_v14 = vrot.slane %v1189_v18, 1  ;;  %v1311_v57 = vsel %vm662_vm0, %v1295_v54, 0.0  ;;  %v1312_v42 = vsel %vm662_vm0, %v1296_v17, 0.0 }
 0x305   :  { %v1268_v52 = vmul.f32 %v1922_v16, %v1219_v58  ;;  %v3006_v53 = vpop.xlane.xlu0 %1098  ;;  %v3008_v21 = vpop.xlane.xlu1 %1101  ;;  %v1313_v26 = vadd.f32 %v1312_v42, %v1311_v57  ;;  %v1153_v23 = vrot.slane %v1152_v0, 2 }
 0x306   :  { %v3004_v40 = vadd.f32 %v1190_v14, %v1189_v18  ;;  %v1924_v12 = vpop.eup %1923  ;;  %v1133_v56 = vmul.f32 %v3006_v53, %v3006_v53  ;;  %v1134_v4 = vmul.f32 %v3008_v21, %v3008_v21 }
 0x307   :  { %v1283_v63 = vmul.f32 %v1268_v52, %v2962_v1  ;;  %v1284_v32 = vmul.f32 %v1268_v52, %v2964_v43  ;;  %v1314_v31 = vrot.slane %v1313_v26, 4  ;;  %v1228_v1 = vmul.f32 %v1924_v12, %v2986_v28  ;;  %v1926_v17 = vpop.eup %1925 }
 0x308   :  { %1927 = vrsqrt.f32 %v3004_v40  ;;  %v1261_v55 = vadd.f32 1.0, %v3004_v40  ;;  %v1154_v43 = vadd.f32 %v1153_v23, %v1152_v0  ;;  %v1164_v36 = vadd.f32 %v1134_v4, %v1133_v56 }
 0x309   :  { %v1299_v9 = vmul.f32 %v1283_v63, %v2496_v24  ;;  %v1300_v38 = vmul.f32 %v1284_v32, %v3518_v13  ;;  %v1315_v2 = vadd.f32 %v1314_v31, %v1313_v26  ;;  %v1230_v18 = vsel %vm1229_vm6, %v2986_v28, %v1228_v1 }
 0x30a   :  { %1929 = vrcp.f32 %v1261_v55  ;;  %v1155_v34 = vrot.slane %v1154_v43, 1  ;;  %v1233_v58 = vsel %vm1231_vm7, %v1232_v61, %v1230_v18  ;;  %v1165_v26 = vrot.slane %v1164_v36, 4 }
 0x30b   :  { %v1329_v11 = vsel %vm662_vm0, %v1299_v9, 0.0  ;;  %v1330_v30 = vsel %vm662_vm0, %v1300_v38, 0.0  ;;  %v3029_v16 = vpop.xlane.xlu0 %1110  ;;  %v3031_v54 = vpop.xlane.xlu1 %1113  ;;  %v1316_v0 = vrot.slane %v1315_v2, 2  ;;  %v1272_v57 = vmul.f32 %v1926_v17, %v1233_v58 }
 0x30c   :  { %v1331_v8 = vadd.f32 %v1330_v30, %v1329_v11  ;;  %v1137_v14 = vmul.f32 %v3029_v16, %v3029_v16  ;;  %v1138_v52 = vmul.f32 %v3031_v54, %v3031_v54  ;;  %v3039_v42 = vadd.f32 %v1155_v34, %v1154_v43 }
 0x30d   :  { %v1317_v23 = vadd.f32 %v1316_v0, %v1315_v2  ;;  %v1287_v12 = vmul.f32 %v1272_v57, %v2970_v49  ;;  %v1288_v31 = vmul.f32 %v1272_v57, %v2972_v41  ;;  %vm1243_vm8 = vcmp.eq.f32.partialorder %v3004_v40, inf }
 0x30e   :  { %v1332_v63 = vrot.slane %v1331_v8, 4  ;;  %v1178_v32 = vadd.f32 %v1138_v52, %v1137_v14  ;;  %1931 = vrsqrt.f32 %v3039_v42  ;;  %vm1245_vm9 = vcmp.eq.f32.partialorder %v3004_v40, 0.0 }
 0x30f   :  { %v1246_v28 = vand.u32 2147483648, %v3004_v40  ;;  %v1256_v61 = vadd.f32 1.0, %v3039_v42  ;;  %v1166_v9 = vadd.f32 %v1165_v26, %v1164_v36  ;;  %v1303_v55 = vmul.f32 %v1287_v12, %v2542_v60 }
 0x310   :  { %v1304_v1 = vmul.f32 %v1288_v31, %v3519_v3  ;;  %v1179_v43 = vrot.slane %v1178_v32, 4  ;;  %v1318_v49 = vrot.slane %v1317_v23, 1  ;;  %v1333_v30 = vadd.f32 %v1332_v63, %v1331_v8 }
 0x311   :  { %1933 = vrcp.f32 %v1256_v61  ;;  %v1167_v56 = vrot.slane %v1166_v9, 2  ;;  %v1347_v2 = vsel %vm662_vm0, %v1303_v55, 0.0  ;;  %vm1208_vm10 = vcmp.eq.f32.partialorder %v3039_v42, inf }
 0x312   :  { %v1928_v38 = vpop.eup %1927  ;;  %v1348_v18 = vsel %vm662_vm0, %v1304_v1, 0.0  ;;  %v1180_v34 = vadd.f32 %v1179_v43, %v1178_v32  ;;  %v1319_v26 = vadd.f32 %v1318_v49, %v1317_v23  ;;  %v1334_v63 = vrot.slane %v1333_v30, 2 }
 0x313   :  { %v1242_v41 = vmul.f32 %v1928_v38, %v3004_v40  ;;  %v3051_v4 = vpop.xlane.xlu0 %1122  ;;  %v3053_v11 = vpop.xlane.xlu1 %1125  ;;  %v1349_v58 = vadd.f32 %v1348_v18, %v1347_v2  ;;  %v1168_v52 = vadd.f32 %v1167_v56, %v1166_v9  ;;  %vm1210_vm11 = vcmp.eq.f32.partialorder %v3039_v42, 0.0 }
 0x314   :  { %v1141_v36 = vmul.f32 %v3051_v4, %v3051_v4  ;;  %v1930_v17 = vpop.eup %1929  ;;  %v1142_v0 = vmul.f32 %v3053_v11, %v3053_v11  ;;  %v1181_v57 = vrot.slane %v1180_v34, 2  ;;  %v3067_v55 = vadd.f32 %v1319_v26, %v2807_v33 }
 0x315   :  { %v1244_v14 = vsel %vm1243_vm8, %v3004_v40, %v1242_v41  ;;  %v1169_v12 = vrot.slane %v1168_v52, 1  ;;  %v1350_v61 = vrot.slane %v1349_v58, 4  ;;  %v1335_v1 = vadd.f32 %v1334_v63, %v1333_v30 }
 0x316   :  { %v1247_v8 = vsel %vm1245_vm9, %v1246_v28, %v1244_v14  ;;  %v1192_v31 = vadd.f32 %v1142_v0, %v1141_v36  ;;  %v1182_v38 = vadd.f32 %v1181_v57, %v1180_v34  ;;  %v1391_v41 = vsel %vm662_vm0, %v3067_v55, -inf }
 0x317   :  { %v1276_v32 = vmul.f32 %v1930_v17, %v1247_v8  ;;  %v3072_v40 = vadd.f32 %v1169_v12, %v1168_v52  ;;  %1392 = vmax.xlane.f32.xlu0 %v1391_v41  ;;  %v1336_v2 = vrot.slane %v1335_v1, 1  ;;  %v1351_v18 = vadd.f32 %v1350_v61, %v1349_v58 }
 0x318   :  { %v1932_v28 = vpop.eup %1931  ;;  %v1183_v23 = vrot.slane %v1182_v38, 1  ;;  %v1193_v49 = vrot.slane %v1192_v31, 4  ;;  %vm1738_vm7 = vcmask 130112  }
 0x319   :  { %v1291_v9 = vmul.f32 %v1276_v32, %v2978_v35  ;;  %v1292_v43 = vmul.f32 %v1276_v32, %v2980_v19  ;;  %v1207_v35 = vmul.f32 %v1932_v28, %v3039_v42  ;;  %1935 = vrsqrt.f32 %v3072_v40 }
 0x31a   :  { %v1211_v19 = vand.u32 2147483648, %v3039_v42  ;;  %v1258_v30 = vadd.f32 1.0, %v3072_v40  ;;  %v1184_v52 = vadd.f32 %v1183_v23, %v1182_v38  ;;  %v1194_v57 = vadd.f32 %v1193_v49, %v1192_v31 }
 0x31b   :  { %v1307_v33 = vmul.f32 %v1291_v9, %v2608_v50  ;;  %v1308_v56 = vmul.f32 %v1292_v43, %v2455_v44  ;;  %v1934_v34 = vpop.eup %1933  ;;  %v1209_v14 = vsel %vm1208_vm10, %v3039_v42, %v1207_v35  ;;  %v1337_v9 = vadd.f32 %v1336_v2, %v1335_v1 }
 0x31c   :  { %v1212_v8 = vsel %vm1210_vm11, %v1211_v19, %v1209_v14  ;;  %1937 = vrcp.f32 %v1258_v30  ;;  %v1260_v58 = vadd.f32 1.0, %v1184_v52  ;;  %v1195_v32 = vrot.slane %v1194_v57, 2 }
 0x31d   :  { %v1365_v36 = vsel %vm662_vm0, %v1307_v33, 0.0  ;;  %v1366_v17 = vsel %vm662_vm0, %v1308_v56, 0.0  ;;  %v1266_v26 = vmul.f32 %v1934_v34, %v1212_v8  ;;  %1939 = vrsqrt.f32 %v1184_v52 }
 0x31e   :  { %v1367_v0 = vadd.f32 %v1366_v17, %v1365_v36  ;;  %v1352_v43 = vrot.slane %v1351_v18, 2  ;;  %1941 = vrcp.f32 %v1260_v58  ;;  %v1196_v28 = vadd.f32 %v1195_v32, %v1194_v57 }
 0x31f   :  { %v1281_v12 = vmul.f32 %v1266_v26, %v2988_v5  ;;  %v1282_v61 = vmul.f32 %v1266_v26, %v2990_v46  ;;  %v3095_v31 = vadd.f32 %v1337_v9, %v2824_v62  ;;  %vm1222_vm12 = vcmp.eq.f32.partialorder %v3072_v40, inf }
 0x320   :  { %v1368_v63 = vrot.slane %v1367_v0, 4  ;;  %v1353_v49 = vadd.f32 %v1352_v43, %v1351_v18  ;;  %v1197_v41 = vrot.slane %v1196_v28, 1  ;;  %v1225_v18 = vand.u32 2147483648, %v3072_v40 }
 0x321   :  { %v1297_v23 = vmul.f32 %v1281_v12, %v2582_v10  ;;  %v1298_v42 = vmul.f32 %v1282_v61, %v2626_v48  ;;  %v1397_v1 = vsel %vm662_vm0, %v3095_v31, -inf  ;;  %vm1224_vm13 = vcmp.eq.f32.partialorder %v3072_v40, 0.0 }
 0x322   :  { %v1369_v38 = vadd.f32 %v1368_v63, %v1367_v0  ;;  %v1354_v35 = vrot.slane %v1353_v49, 1  ;;  %v3102_v2 = vadd.f32 %v1197_v41, %v1196_v28  ;;  %1398 = vmax.xlane.f32.xlu0 %v1397_v1  ;;  %vm1236_vm14 = vcmp.eq.f32.partialorder %v1184_v52, inf }
 0x323   :  { %v1936_v56 = vpop.eup %1935  ;;  %v1320_v5 = vsel %vm662_vm0, %v1297_v23, 0.0  ;;  %v1321_v46 = vsel %vm662_vm0, %v1298_v42, 0.0  ;;  %vm1238_vm15 = vcmp.eq.f32.partialorder %v1184_v52, 0.0  ;;  %v1239_v12 = vand.u32 2147483648, %v1184_v52 }
 0x324   :  { %v1370_v33 = vrot.slane %v1369_v38, 2  ;;  %v1322_v19 = vadd.f32 %v1321_v46, %v1320_v5  ;;  %v1221_v30 = vmul.f32 %v1936_v56, %v3072_v40  ;;  %v1355_v34 = vadd.f32 %v1354_v35, %v1353_v49 }
 0x325   :  { %1943 = vrsqrt.f32 %v3102_v2  ;;  %v1262_v57 = vadd.f32 1.0, %v3102_v2  ;;  %vm1250_vm1 = vcmp.eq.f32.partialorder %v3102_v2, inf  ;;  %vm1252_vm2 = vcmp.eq.f32.partialorder %v3102_v2, 0.0 }
 0x326   :  { %v1371_v62 = vadd.f32 %v1370_v33, %v1369_v38  ;;  %v1938_v36 = vpop.eup %1937  ;;  %v1323_v17 = vrot.slane %v1322_v19, 4  ;;  %v1223_v14 = vsel %vm1222_vm12, %v3072_v40, %v1221_v30  ;;  %v3111_v58 = vadd.f32 %v1355_v34, %v2839_v25 }
 0x327   :  { %v1940_v0 = vpop.eup %1939  ;;  %v1226_v8 = vsel %vm1224_vm13, %v1225_v18, %v1223_v14  ;;  %1945 = vrcp.f32 %v1262_v57  ;;  %vm1803_vm10 = vcmask 1041409   ;;  %vm1812_vm12 = vcmask 123904  }
 0x328   :  { %v1270_v26 = vmul.f32 %v1938_v36, %v1226_v8  ;;  %v1235_v63 = vmul.f32 %v1940_v0, %v1184_v52  ;;  %v1372_v32 = vrot.slane %v1371_v62, 1  ;;  %v1324_v61 = vadd.f32 %v1323_v17, %v1322_v19  ;;  %v1942_v9 = vpop.eup %1941 }
 0x329   :  { %v1403_v38 = vsel %vm662_vm0, %v3111_v58, -inf  ;;  %v1253_v17 = vand.u32 2147483648, %v3102_v2 }
 0x32a   :  { %v1285_v40 = vmul.f32 %v1270_v26, %v3006_v53  ;;  %v1286_v43 = vmul.f32 %v1270_v26, %v3008_v21  ;;  %v1237_v28 = vsel %vm1236_vm14, %v1184_v52, %v1235_v63  ;;  %1404 = vmax.xlane.f32.xlu0 %v1403_v38  ;;  %v1373_v42 = vadd.f32 %v1372_v32, %v1371_v62 }
 0x32b   :  { %v1240_v23 = vsel %vm1238_vm15, %v1239_v12, %v1237_v28  ;;  %v1325_v49 = vrot.slane %v1324_v61, 2 }
 0x32c   :  { %v1301_v25 = vmul.f32 %v1285_v40, %v2641_v20  ;;  %v1302_v41 = vmul.f32 %v1286_v43, %v2660_v51  ;;  %v1274_v33 = vmul.f32 %v1942_v9, %v1240_v23  ;;  %v3120_v56 = vadd.f32 %v1373_v42, %v2856_v45 }
 0x32d   :  { %v1326_v5 = vadd.f32 %v1325_v49, %v1324_v61 }
 0x32e   :  { %v1338_v53 = vsel %vm662_vm0, %v1301_v25, 0.0  ;;  %v1339_v21 = vsel %vm662_vm0, %v1302_v41, 0.0  ;;  %v1289_v52 = vmul.f32 %v1274_v33, %v3029_v16  ;;  %v1290_v46 = vmul.f32 %v1274_v33, %v3031_v54 }
 0x32f   :  { %v1340_v1 = vadd.f32 %v1339_v21, %v1338_v53  ;;  %v1409_v35 = vsel %vm662_vm0, %v3120_v56, -inf  ;;  %v1327_v19 = vrot.slane %v1326_v5, 1  ;;  %v1944_v30 = vpop.eup %1943 }
 0x330   :  { %v1305_v62 = vmul.f32 %v1289_v52, %v2676_v59  ;;  %v1306_v45 = vmul.f32 %v1290_v46, %v2694_v15  ;;  %1410 = vmax.xlane.f32.xlu0 %v1409_v35  ;;  %v1249_v34 = vmul.f32 %v1944_v30, %v3102_v2 }
 0x331   :  { %v1341_v18 = vrot.slane %v1340_v1, 4  ;;  %v1328_v36 = vadd.f32 %v1327_v19, %v1326_v5  ;;  %v1946_v14 = vpop.eup %1945 }
 0x332   :  { %v1356_v16 = vsel %vm662_vm0, %v1305_v62, 0.0  ;;  %v1357_v54 = vsel %vm662_vm0, %v1306_v45, 0.0  ;;  %v1251_v8 = vsel %vm1250_vm1, %v3102_v2, %v1249_v34 }
 0x333   :  { %v1358_v0 = vadd.f32 %v1357_v54, %v1356_v16  ;;  %v1384_v57 = vadd.f32 %v1328_v36, %v2866_v39  ;;  %v1342_v26 = vadd.f32 %v1341_v18, %v1340_v1  ;;  %v1254_v63 = vsel %vm1252_vm2, %v1253_v17, %v1251_v8 }
 0x334   :  { %v1278_v12 = vmul.f32 %v1946_v14, %v1254_v63 }
 0x335   :  { %v1359_v32 = vrot.slane %v1358_v0, 4  ;;  %v1394_v61 = vsel %vm662_vm0, %v1384_v57, -inf  ;;  %v1343_v9 = vrot.slane %v1342_v26, 2 }
 0x336   :  { %1395 = vmax.xlane.f32.xlu1 %v1394_v61  ;;  %v1293_v40 = vmul.f32 %v1278_v12, %v3051_v4  ;;  %v1294_v43 = vmul.f32 %v1278_v12, %v3053_v11 }
 0x337   :  { %v1344_v28 = vadd.f32 %v1343_v9, %v1342_v26  ;;  %v1360_v38 = vadd.f32 %v1359_v32, %v1358_v0 }
 0x338   :  { %v1309_v23 = vmul.f32 %v1293_v40, %v2704_v6  ;;  %v1310_v2 = vmul.f32 %v1294_v43, %v2710_v29 }
 0x339   :  { %v1345_v42 = vrot.slane %v1344_v28, 1  ;;  %v1361_v39 = vrot.slane %v1360_v38, 2 }
 0x33a   :  { %v1374_v49 = vsel %vm662_vm0, %v1309_v23, 0.0  ;;  %v1375_v25 = vsel %vm662_vm0, %v1310_v2, 0.0 }
 0x33b   :  { %v1346_v41 = vadd.f32 %v1345_v42, %v1344_v28  ;;  %v1362_v33 = vadd.f32 %v1361_v39, %v1360_v38  ;;  %v1376_v5 = vadd.f32 %v1375_v25, %v1374_v49 }
 0x33d   :  { %v1386_v53 = vadd.f32 %v1346_v41, %v2878_v27  ;;  %v1363_v4 = vrot.slane %v1362_v33, 1  ;;  %v1377_v21 = vrot.slane %v1376_v5, 4 }
 0x33f   :  { %v1400_v11 = vsel %vm662_vm0, %v1386_v53, -inf  ;;  %v1364_v52 = vadd.f32 %v1363_v4, %v1362_v33  ;;  %v1378_v46 = vadd.f32 %v1377_v21, %v1376_v5 }
 0x340   :  { %1401 = vmax.xlane.f32.xlu1 %v1400_v11 }
 0x341   :  { %v1388_v1 = vadd.f32 %v1364_v52, %v2882_v47  ;;  %v1379_v35 = vrot.slane %v1378_v46, 2 }
 0x343   :  { %v1406_v19 = vsel %vm662_vm0, %v1388_v1, -inf  ;;  %v1380_v30 = vadd.f32 %v1379_v35, %v1378_v46 }
 0x344   :  { %1407 = vmax.xlane.f32.xlu1 %v1406_v19 }
 0x345   :  { %v1381_v62 = vrot.slane %v1380_v30, 1 }
 0x347   :  { %v1382_v45 = vadd.f32 %v1381_v62, %v1380_v30 }
 0x349   :  { %v1390_v18 = vadd.f32 %v1382_v45, %v2886_v7 }
 0x34b   :  { %v1412_v27 = vsel %vm662_vm0, %v1390_v18, -inf }
 0x34c   :  { %1413 = vmax.xlane.f32.xlu1 %v1412_v27 }
 0x3a4   :  { %v1393_v34 = vpop.xlane.xlu0 %1392 }
 0x3a5   :  { %v1415_v36 = vsub.f32 %v3067_v55, %v1393_v34 }
 0x3a7   :  { %v1423_v16 = vmul.f32 1.442695, %v1415_v36 }
 0x3a9   :  { %1947 = vpow2.f32 %v1423_v16 }
 0x3af   :  { %v1399_v54 = vpop.xlane.xlu0 %1398 }
 0x3b0   :  { %v1417_v47 = vsub.f32 %v3095_v31, %v1399_v54 }
 0x3b2   :  { %v1427_v17 = vmul.f32 1.442695, %v1417_v47 }
 0x3b3   :  { %v1948_v14 = vpop.eup %1947 }
 0x3b4   :  { %1949 = vpow2.f32 %v1427_v17  ;;  %v1439_v0 = vsel %vm662_vm0, %v1948_v14, 0.0 }
 0x3b5   :  { %1440 = vadd.xlane.f32.xlu0 %v1439_v0 }
 0x3b7   :  { %v1405_v8 = vpop.xlane.xlu0 %1404 }
 0x3b8   :  { %v1419_v7 = vsub.f32 %v3111_v58, %v1405_v8 }
 0x3ba   :  { %v1431_v26 = vmul.f32 1.442695, %v1419_v7 }
 0x3bc   :  { %1951 = vpow2.f32 %v1431_v26 }
 0x3bd   :  { %v1411_v63 = vpop.xlane.xlu0 %1410 }
 0x3be   :  { %v1421_v32 = vsub.f32 %v3120_v56, %v1411_v63  ;;  %v1950_v55 = vpop.eup %1949 }
 0x3bf   :  { %v1445_v61 = vsel %vm662_vm0, %v1950_v55, 0.0 }
 0x3c0   :  { %v1435_v12 = vmul.f32 1.442695, %v1421_v32  ;;  %1446 = vadd.xlane.f32.xlu0 %v1445_v61 }
 0x3c2   :  { %1953 = vpow2.f32 %v1435_v12 }
 0x3c3   :  { %v1396_v31 = vpop.xlane.xlu1 %1395 }
 0x3c4   :  { %v1416_v9 = vsub.f32 %v1384_v57, %v1396_v31 }
 0x3c6   :  { %v1425_v40 = vmul.f32 1.442695, %v1416_v9  ;;  %v1952_v43 = vpop.eup %1951 }
 0x3c7   :  { %v1451_v28 = vsel %vm662_vm0, %v1952_v43, 0.0 }
 0x3c8   :  { %1955 = vpow2.f32 %v1425_v40  ;;  %1452 = vadd.xlane.f32.xlu0 %v1451_v28 }
 0x3cc   :  { %v1954_v58 = vpop.eup %1953 }
 0x3cd   :  { %v1402_v38 = vpop.xlane.xlu1 %1401  ;;  %v1457_v23 = vsel %vm662_vm0, %v1954_v58, 0.0 }
 0x3ce   :  { %v1418_v2 = vsub.f32 %v1386_v53, %v1402_v38  ;;  %1458 = vadd.xlane.f32.xlu0 %v1457_v23 }
 0x3d0   :  { %v1429_v56 = vmul.f32 1.442695, %v1418_v2 }
 0x3d1   :  { %v1408_v42 = vpop.xlane.xlu1 %1407 }
 0x3d2   :  { %v3159_v39 = vpop.eup %1955  ;;  %1957 = vpow2.f32 %v1429_v56  ;;  %v1420_v49 = vsub.f32 %v1388_v1, %v1408_v42 }
 0x3d3   :  { %v1442_v57 = vsel %vm662_vm0, %v3159_v39, 0.0 }
 0x3d4   :  { %v1433_v25 = vmul.f32 1.442695, %v1420_v49  ;;  %1443 = vadd.xlane.f32.xlu1 %v1442_v57 }
 0x3d6   :  { %1959 = vpow2.f32 %v1433_v25 }
 0x3d9   :  { %v1414_v41 = vpop.xlane.xlu1 %1413 }
 0x3da   :  { %v1422_v33 = vsub.f32 %v1390_v18, %v1414_v41 }
 0x3dc   :  { %v3163_v5 = vpop.eup %1957  ;;  %v1437_v4 = vmul.f32 1.442695, %v1422_v33 }
 0x3dd   :  { %v1448_v53 = vsel %vm662_vm0, %v3163_v5, 0.0 }
 0x3de   :  { %1449 = vadd.xlane.f32.xlu1 %v1448_v53  ;;  %1961 = vpow2.f32 %v1437_v4 }
 0x3e0   :  { %v3167_v21 = vpop.eup %1959 }
 0x3e1   :  { %v1454_v11 = vsel %vm662_vm0, %v3167_v21, 0.0 }
 0x3e2   :  { %1455 = vadd.xlane.f32.xlu1 %v1454_v11 }
 0x3e8   :  { %v3171_v52 = vpop.eup %1961 }
 0x3e9   :  { %v1460_v46 = vsel %vm662_vm0, %v3171_v52, 0.0 }
 0x3ea   :  { %1461 = vadd.xlane.f32.xlu1 %v1460_v46 }
 0x442   :  { %v1441_v1 = vpop.xlane.xlu0 %1440 }
 0x443   :  { %1963 = vrcp.f32 %v1441_v1 }
 0x44d   :  { %v1964_v35 = vpop.eup %1963  ;;  %v1447_v19 = vpop.xlane.xlu0 %1446 }
 0x44e   :  { %1965 = vrcp.f32 %v1447_v19  ;;  %v1464_v30 = vmul.f32 %v1964_v35, %v1948_v14 }
 0x450   :  { %v1479_v62 = vmul.f32 %v1464_v30, %v3517_v37  ;;  %v1480_v45 = vmul.f32 %v1464_v30, %v2442_v22 }
 0x452   :  { %v1495_v18 = vsel %vm662_vm0, %v1479_v62, 0.0  ;;  %v1498_v27 = vsel %vm662_vm0, %v1480_v45, 0.0 }
 0x453   :  { %1496 = vadd.xlane.f32.xlu0 %v1495_v18  ;;  %1499 = vadd.xlane.f32.xlu1 %v1498_v27 }
 0x455   :  { %v1453_v34 = vpop.xlane.xlu0 %1452 }
 0x456   :  { %1967 = vrcp.f32 %v1453_v34 }
 0x458   :  { %v1966_v36 = vpop.eup %1965 }
 0x459   :  { %v1468_v54 = vmul.f32 %v1966_v36, %v1950_v55 }
 0x45b   :  { %v1459_v16 = vpop.xlane.xlu0 %1458  ;;  %v1483_v47 = vmul.f32 %v1468_v54, %v2496_v24  ;;  %v1484_v17 = vmul.f32 %v1468_v54, %v3518_v13 }
 0x45c   :  { %1969 = vrcp.f32 %v1459_v16 }
 0x45d   :  { %v1507_v37 = vsel %vm662_vm0, %v1483_v47, 0.0  ;;  %v1510_v22 = vsel %vm662_vm0, %v1484_v17, 0.0 }
 0x45e   :  { %1508 = vadd.xlane.f32.xlu0 %v1507_v37  ;;  %1511 = vadd.xlane.f32.xlu1 %v1510_v22 }
 0x460   :  { %v1968_v14 = vpop.eup %1967 }
 0x461   :  { %v1444_v0 = vpop.xlane.xlu1 %1443  ;;  %v1472_v8 = vmul.f32 %v1968_v14, %v1952_v43 }
 0x462   :  { %1971 = vrcp.f32 %v1444_v0 }
 0x463   :  { %v1487_v7 = vmul.f32 %v1472_v8, %v2542_v60  ;;  %v1488_v26 = vmul.f32 %v1472_v8, %v3519_v3 }
 0x465   :  { %v1519_v32 = vsel %vm662_vm0, %v1487_v7, 0.0  ;;  %v1522_v24 = vsel %vm662_vm0, %v1488_v26, 0.0 }
 0x466   :  { %v1970_v63 = vpop.eup %1969  ;;  %1520 = vadd.xlane.f32.xlu0 %v1519_v32  ;;  %1523 = vadd.xlane.f32.xlu1 %v1522_v24 }
 0x467   :  { %v1476_v13 = vmul.f32 %v1970_v63, %v1954_v58 }
 0x469   :  { %v1491_v55 = vmul.f32 %v1476_v13, %v2608_v50  ;;  %v1492_v12 = vmul.f32 %v1476_v13, %v2455_v44 }
 0x46b   :  { %v1450_v61 = vpop.xlane.xlu1 %1449  ;;  %v1531_v31 = vsel %vm662_vm0, %v1491_v55, 0.0  ;;  %v1534_v9 = vsel %vm662_vm0, %v1492_v12, 0.0 }
 0x46c   :  { %v1972_v60 = vpop.eup %1971  ;;  %1973 = vrcp.f32 %v1450_v61  ;;  %1532 = vadd.xlane.f32.xlu0 %v1531_v31  ;;  %1535 = vadd.xlane.f32.xlu1 %v1534_v9 }
 0x46d   :  { %v1466_v3 = vmul.f32 %v1972_v60, %v3159_v39 }
 0x46f   :  { %v1456_v40 = vpop.xlane.xlu1 %1455  ;;  %v1482_v43 = vmul.f32 %v1466_v3, %v2626_v48  ;;  %v1481_v28 = vmul.f32 %v1466_v3, %v2582_v10 }
 0x470   :  { %1975 = vrcp.f32 %v1456_v40 }
 0x471   :  { %v1504_v50 = vsel %vm662_vm0, %v1482_v43, 0.0  ;;  %v1501_v44 = vsel %vm662_vm0, %v1481_v28, 0.0 }
 0x472   :  { %1505 = vadd.xlane.f32.xlu1 %v1504_v50  ;;  %1502 = vadd.xlane.f32.xlu0 %v1501_v44 }
 0x476   :  { %v1974_v58 = vpop.eup %1973 }
 0x477   :  { %v1470_v38 = vmul.f32 %v1974_v58, %v3163_v5  ;;  %v1462_v23 = vpop.xlane.xlu1 %1461 }
 0x478   :  { %1977 = vrcp.f32 %v1462_v23 }
 0x479   :  { %v1486_v2 = vmul.f32 %v1470_v38, %v2660_v51  ;;  %v1485_v56 = vmul.f32 %v1470_v38, %v2641_v20 }
 0x47a   :  { %v1976_v42 = vpop.eup %1975 }
 0x47b   :  { %v1516_v48 = vsel %vm662_vm0, %v1486_v2, 0.0  ;;  %v1513_v10 = vsel %vm662_vm0, %v1485_v56, 0.0  ;;  %v1474_v39 = vmul.f32 %v1976_v42, %v3167_v21 }
 0x47c   :  { %1517 = vadd.xlane.f32.xlu1 %v1516_v48  ;;  %1514 = vadd.xlane.f32.xlu0 %v1513_v10 }
 0x47d   :  { %v1490_v49 = vmul.f32 %v1474_v39, %v2694_v15  ;;  %v1489_v57 = vmul.f32 %v1474_v39, %v2676_v59 }
 0x47f   :  { %v1528_v25 = vsel %vm662_vm0, %v1490_v49, 0.0  ;;  %v1525_v41 = vsel %vm662_vm0, %v1489_v57, 0.0 }
 0x480   :  { %1529 = vadd.xlane.f32.xlu1 %v1528_v25  ;;  %1526 = vadd.xlane.f32.xlu0 %v1525_v41 }
 0x482   :  { %v1978_v20 = vpop.eup %1977 }
 0x483   :  { %v1478_v51 = vmul.f32 %v1978_v20, %v3171_v52 }
 0x485   :  { %v1494_v33 = vmul.f32 %v1478_v51, %v2710_v29  ;;  %v1493_v5 = vmul.f32 %v1478_v51, %v2704_v6 }
 0x487   :  { %v1540_v4 = vsel %vm662_vm0, %v1494_v33, 0.0  ;;  %v1537_v53 = vsel %vm662_vm0, %v1493_v5, 0.0 }
 0x488   :  { %1541 = vadd.xlane.f32.xlu1 %v1540_v4  ;;  %1538 = vadd.xlane.f32.xlu0 %v1537_v53 }
 0x4e0   :  { %v3211_v59 = vpop.xlane.xlu0 %1496  ;;  %v3213_v15 = vpop.xlane.xlu1 %1499 }
 0x4e1   :  { %v1543_v21 = vmul.f32 %v3211_v59, %v3211_v59  ;;  %v1544_v11 = vmul.f32 %v3213_v15, %v3213_v15 }
 0x4e3   :  { %v1559_v52 = vadd.f32 %v1544_v11, %v1543_v21 }
 0x4e5   :  { %v1560_v29 = vrot.slane %v1559_v52, 4 }
 0x4e7   :  { %v1561_v46 = vadd.f32 %v1560_v29, %v1559_v52 }
 0x4e9   :  { %v1562_v35 = vrot.slane %v1561_v46, 2 }
 0x4eb   :  { %v3219_v6 = vpop.xlane.xlu0 %1508  ;;  %v3221_v1 = vpop.xlane.xlu1 %1511  ;;  %v1563_v45 = vadd.f32 %v1562_v35, %v1561_v46  ;;  %v3520_v35 = vlaneseq }
 0x4ec   :  { %v1547_v19 = vmul.f32 %v3219_v6, %v3219_v6  ;;  %v1548_v30 = vmul.f32 %v3221_v1, %v3221_v1 }
 0x4ed   :  { %v1564_v54 = vrot.slane %v1563_v45, 1 }
 0x4ee   :  { %v1573_v62 = vadd.f32 %v1548_v30, %v1547_v19  ;;  %v1728_v19 = vand.u32 127, %v3520_v35 }
 0x4ef   :  { %v1565_v0 = vadd.f32 %v1564_v54, %v1563_v45 }
 0x4f0   :  { %v1574_v18 = vrot.slane %v1573_v62, 4 }
 0x4f1   :  { %1979 = vrsqrt.f32 %v1565_v0  ;;  %v1671_v28 = vadd.f32 1.0, %v1565_v0  ;;  %vm1617_vm0 = vcmp.eq.f32.partialorder %v1565_v0, inf  ;;  %v1620_v46 = vand.u32 2147483648, %v1565_v0 }
 0x4f2   :  { %v1575_v47 = vadd.f32 %v1574_v18, %v1573_v62  ;;  %vm1619_vm3 = vcmp.eq.f32.partialorder %v1565_v0, 0.0 }
 0x4f3   :  { %v3227_v27 = vpop.xlane.xlu0 %1520  ;;  %v3229_v34 = vpop.xlane.xlu1 %1523  ;;  %1981 = vrcp.f32 %v1671_v28 }
 0x4f4   :  { %v1551_v36 = vmul.f32 %v3227_v27, %v3227_v27  ;;  %v1552_v16 = vmul.f32 %v3229_v34, %v3229_v34  ;;  %v1576_v8 = vrot.slane %v1575_v47, 2 }
 0x4f6   :  { %v1587_v17 = vadd.f32 %v1552_v16, %v1551_v36  ;;  %v1577_v32 = vadd.f32 %v1576_v8, %v1575_v47  ;;  %v1733_v8 = vadd.s32 4294967288, %v1728_v19 }
 0x4f8   :  { %v1588_v37 = vrot.slane %v1587_v17, 4  ;;  %v1578_v60 = vrot.slane %v1577_v32, 1 }
 0x4f9   :  { %v3235_v22 = vpop.xlane.xlu0 %1532  ;;  %v3237_v14 = vpop.xlane.xlu1 %1535 }
 0x4fa   :  { %v1589_v7 = vadd.f32 %v1588_v37, %v1587_v17  ;;  %v1555_v26 = vmul.f32 %v3235_v22, %v3235_v22  ;;  %v1556_v63 = vmul.f32 %v3237_v14, %v3237_v14  ;;  %v3251_v58 = vadd.f32 %v1578_v60, %v1577_v32 }
 0x4fb   :  { %v1980_v44 = vpop.eup %1979 }
 0x4fc   :  { %v1590_v55 = vrot.slane %v1589_v7, 2  ;;  %v1601_v12 = vadd.f32 %v1556_v63, %v1555_v26  ;;  %v1616_v39 = vmul.f32 %v1980_v44, %v1565_v0  ;;  %1983 = vrsqrt.f32 %v3251_v58 }
 0x4fd   :  { %v1673_v36 = vadd.f32 1.0, %v3251_v58  ;;  %v1982_v54 = vpop.eup %1981  ;;  %vm1631_vm4 = vcmp.eq.f32.partialorder %v3251_v58, inf  ;;  %v1634_v44 = vand.u32 2147483648, %v3251_v58  ;;  %vm1633_vm8 = vcmp.eq.f32.partialorder %v3251_v58, 0.0 }
 0x4fe   :  { %v1591_v3 = vadd.f32 %v1590_v55, %v1589_v7  ;;  %v1602_v40 = vrot.slane %v1601_v12, 4  ;;  %v1618_v53 = vsel %vm1617_vm0, %v1565_v0, %v1616_v39 }
 0x4ff   :  { %v3243_v24 = vpop.xlane.xlu0 %1502  ;;  %v3245_v13 = vpop.xlane.xlu1 %1505  ;;  %v1621_v62 = vsel %vm1619_vm3, %v1620_v46, %v1618_v53 }
 0x500   :  { %v1545_v61 = vmul.f32 %v3243_v24, %v3243_v24  ;;  %v1546_v31 = vmul.f32 %v3245_v13, %v3245_v13  ;;  %v1592_v38 = vrot.slane %v1591_v3, 1  ;;  %v1603_v23 = vadd.f32 %v1602_v40, %v1601_v12 }
 0x501   :  { %v1680_v7 = vmul.f32 %v1982_v54, %v1621_v62 }
 0x502   :  { %v1566_v9 = vadd.f32 %v1546_v31, %v1545_v61  ;;  %v3262_v57 = vadd.f32 %v1592_v38, %v1591_v3  ;;  %v1604_v25 = vrot.slane %v1603_v23, 2 }
 0x503   :  { %v1696_v39 = vmul.f32 %v1680_v7, %v3213_v15 }
 0x504   :  { %v1567_v43 = vrot.slane %v1566_v9, 4  ;;  %1985 = vrsqrt.f32 %v3262_v57  ;;  %v1605_v11 = vadd.f32 %v1604_v25, %v1603_v23  ;;  %v1675_v0 = vadd.f32 1.0, %v3262_v57 }
 0x505   :  { %vm1645_vm9 = vcmp.eq.f32.partialorder %v3262_v57, inf  ;;  %vm1647_vm11 = vcmp.eq.f32.partialorder %v3262_v57, 0.0 }
 0x506   :  { %v1568_v50 = vadd.f32 %v1567_v43, %v1566_v9  ;;  %v1606_v16 = vrot.slane %v1605_v11, 1  ;;  %v1984_v37 = vpop.eup %1983  ;;  %v3521_v9 = vld [vmem:[#allocation11_spill] sm:$0xff] }
 0x507   :  { %v3287_v60 = vsub.s32 %v1728_v19, %v3521_v9  ;;  %v1630_v3 = vmul.f32 %v1984_v37, %v3251_v58 }
 0x508   :  { %v1569_v2 = vrot.slane %v1568_v50, 2  ;;  %v3282_v61 = vadd.f32 %v1606_v16, %v1605_v11 }
 0x509   :  { %v3253_v56 = vpop.xlane.xlu0 %1514  ;;  %v3255_v42 = vpop.xlane.xlu1 %1517 }
 0x50a   :  { %v1549_v48 = vmul.f32 %v3253_v56, %v3253_v56  ;;  %v1550_v10 = vmul.f32 %v3255_v42, %v3255_v42  ;;  %v1570_v49 = vadd.f32 %v1569_v2, %v1568_v50  ;;  %v3291_v50 = vsub.s32 %v1733_v8, %v3521_v9 }
 0x50b   :  { %v1695_v2 = vmul.f32 %v1680_v7, %v3211_v59  ;;  %v1677_v54 = vadd.f32 1.0, %v3282_v61  ;;  %vm1659_vm14 = vcmp.eq.f32.partialorder %v3282_v61, inf  ;;  %vm1661_vm0 = vcmp.eq.f32.partialorder %v3282_v61, 0.0 }
 0x50c   :  { %v1571_v41 = vrot.slane %v1570_v49, 1  ;;  %v1580_v33 = vadd.f32 %v1550_v10, %v1549_v48  ;;  %v1737_v19 = vrot.slane %v1696_v39, %v3291_v50 }
 0x50d   :  { %v3264_v20 = vpop.xlane.xlu0 %1526  ;;  %v3266_v51 = vpop.xlane.xlu1 %1529  ;;  %v1732_v35 = vrot.slane %v1695_v2, %v3287_v60 }
 0x50e   :  { %v1553_v5 = vmul.f32 %v3264_v20, %v3264_v20  ;;  %v1554_v4 = vmul.f32 %v3266_v51, %v3266_v51  ;;  %v1572_v21 = vadd.f32 %v1571_v41, %v1570_v49  ;;  %v1581_v52 = vrot.slane %v1580_v33, 4  ;;  %v1986_v28 = vpop.eup %1985 }
 0x50f   :  { %v1632_v41 = vsel %vm1631_vm4, %v3251_v58, %v1630_v3  ;;  %v1739_v7 = vsel %vm1738_vm7, %v1737_v19, %v1732_v35 }
 0x510   :  { %v1594_v29 = vadd.f32 %v1554_v4, %v1553_v5  ;;  %1987 = vrsqrt.f32 %v1572_v21  ;;  %v1672_v30 = vadd.f32 1.0, %v1572_v21  ;;  %v1582_v45 = vadd.f32 %v1581_v52, %v1580_v33 }
 0x511   :  { %vm1624_vm5 = vcmp.eq.f32.partialorder %v1572_v21, inf  ;;  %v1627_v33 = vand.u32 2147483648, %v1572_v21  ;;  %v1644_v5 = vmul.f32 %v1986_v28, %v3262_v57  ;;  %vm1626_vm6 = vcmp.eq.f32.partialorder %v1572_v21, 0.0 }
 0x512   :  { %v1595_v18 = vrot.slane %v1594_v29, 4  ;;  %1989 = vrcp.f32 %v1672_v30  ;;  %v1583_v47 = vrot.slane %v1582_v45, 2  ;;  %v1635_v52 = vsel %vm1633_vm8, %v1634_v44, %v1632_v41 }
 0x513   :  { %1991 = vrcp.f32 %v1673_v36  ;;  %v1646_v30 = vsel %vm1645_vm9, %v3262_v57, %v1644_v5  ;;  %v1648_v36 = vand.u32 2147483648, %v3262_v57 }
 0x514   :  { %v1596_v17 = vadd.f32 %v1595_v18, %v1594_v29  ;;  %v1584_v32 = vadd.f32 %v1583_v47, %v1582_v45  ;;  %1993 = vrcp.f32 %v1675_v0 }
 0x515   :  { %v3275_v26 = vpop.xlane.xlu0 %1538  ;;  %v3277_v63 = vpop.xlane.xlu1 %1541  ;;  %1995 = vrsqrt.f32 %v3282_v61  ;;  %v1649_v8 = vsel %vm1647_vm11, %v1648_v36, %v1646_v30 }
 0x516   :  { %v1597_v55 = vrot.slane %v1596_v17, 2  ;;  %v1557_v12 = vmul.f32 %v3275_v26, %v3275_v26  ;;  %v1558_v31 = vmul.f32 %v3277_v63, %v3277_v63  ;;  %v1585_v40 = vrot.slane %v1584_v32, 1 }
 0x518   :  { %v1598_v43 = vadd.f32 %v1597_v55, %v1596_v17  ;;  %v1608_v38 = vadd.f32 %v1558_v31, %v1557_v12  ;;  %v3296_v48 = vadd.f32 %v1585_v40, %v1584_v32 }
 0x51a   :  { %v1988_v23 = vpop.eup %1987  ;;  %v1599_v10 = vrot.slane %v1598_v43, 1  ;;  %v1609_v25 = vrot.slane %v1608_v38, 4  ;;  %1997 = vrsqrt.f32 %v3296_v48  ;;  %v1674_v59 = vadd.f32 1.0, %v3296_v48 }
 0x51b   :  { %v1623_v49 = vmul.f32 %v1988_v23, %v1572_v21  ;;  %vm1638_vm13 = vcmp.eq.f32.partialorder %v3296_v48, inf  ;;  %vm1640_vm15 = vcmp.eq.f32.partialorder %v3296_v48, 0.0 }
 0x51c   :  { %v1990_v53 = vpop.eup %1989  ;;  %v3305_v11 = vadd.f32 %v1599_v10, %v1598_v43  ;;  %1999 = vrcp.f32 %v1674_v59  ;;  %v1610_v46 = vadd.f32 %v1609_v25, %v1608_v38  ;;  %v1641_v43 = vand.u32 2147483648, %v3296_v48 }
 0x51d   :  { %v1625_v4 = vsel %vm1624_vm5, %v1572_v21, %v1623_v49  ;;  %v1992_v21 = vpop.eup %1991 }
 0x51e   :  { %v1628_v15 = vsel %vm1626_vm6, %v1627_v33, %v1625_v4  ;;  %2001 = vrsqrt.f32 %v3305_v11  ;;  %v1676_v45 = vadd.f32 1.0, %v3305_v11  ;;  %v1684_v18 = vmul.f32 %v1992_v21, %v1635_v52  ;;  %v1994_v37 = vpop.eup %1993 }
 0x51f   :  { %v1682_v29 = vmul.f32 %v1990_v53, %v1628_v15  ;;  %v1611_v16 = vrot.slane %v1610_v46, 2  ;;  %v1688_v9 = vmul.f32 %v1994_v37, %v1649_v8  ;;  %vm1652_vm1 = vcmp.eq.f32.partialorder %v3305_v11, inf }
 0x520   :  { %2003 = vrcp.f32 %v1676_v45  ;;  %v1699_v55 = vmul.f32 %v1684_v18, %v3219_v6  ;;  %v1700_v57 = vmul.f32 %v1684_v18, %v3221_v1  ;;  %vm1654_vm2 = vcmp.eq.f32.partialorder %v3305_v11, 0.0 }
 0x521   :  { %v1697_v58 = vmul.f32 %v1682_v29, %v3243_v24  ;;  %v1698_v62 = vmul.f32 %v1682_v29, %v3245_v13  ;;  %v1612_v24 = vadd.f32 %v1611_v16, %v1610_v46  ;;  %v1996_v13 = vpop.eup %1995  ;;  %2005 = vrcp.f32 %v1677_v54 }
 0x522   :  { %v1658_v40 = vmul.f32 %v1996_v13, %v3282_v61  ;;  %v1752_v38 = vrot.slane %v1699_v55, %v3287_v60  ;;  %v1756_v23 = vrot.slane %v1700_v57, %v3291_v50  ;;  %v1703_v10 = vmul.f32 %v1688_v9, %v3227_v27 }
 0x523   :  { %v1743_v47 = vrot.slane %v1697_v58, %v3287_v60  ;;  %v1747_v17 = vrot.slane %v1698_v62, %v3291_v50  ;;  %v1613_v31 = vrot.slane %v1612_v24, 1  ;;  %v1704_v41 = vmul.f32 %v1688_v9, %v3229_v34 }
 0x524   :  { %v1998_v32 = vpop.eup %1997  ;;  %v1660_v33 = vsel %vm1659_vm14, %v3282_v61, %v1658_v40  ;;  %v1662_v53 = vand.u32 2147483648, %v3282_v61 }
 0x525   :  { %v1748_v0 = vsel %vm1738_vm7, %v1747_v17, %v1743_v47  ;;  %v1637_v3 = vmul.f32 %v1998_v32, %v3296_v48  ;;  %v1614_v28 = vadd.f32 %v1613_v31, %v1612_v24 }
 0x526   :  { %v1804_v12 = vsel %vm1803_vm10, %v1748_v0, %v1739_v7  ;;  %v2000_v44 = vpop.eup %1999  ;;  %v1663_v46 = vsel %vm1661_vm0, %v1662_v53, %v1660_v33 }
 0x527   :  { %1813 = vst.msk [vmem:[#allocation7] sm:$0x3] %vm1812_vm12, %v1804_v12  ;;  %v1639_v6 = vsel %vm1638_vm13, %v3296_v48, %v1637_v3  ;;  %2007 = vrsqrt.f32 %v1614_v28  ;;  %v1678_v25 = vadd.f32 1.0, %v1614_v28  ;;  %v1655_v48 = vand.u32 2147483648, %v3305_v11 }
 0x528   :  { %v2002_v1 = vpop.eup %2001  ;;  %v1642_v2 = vsel %vm1640_vm15, %v1641_v43, %v1639_v6  ;;  %vm1666_vm3 = vcmp.eq.f32.partialorder %v1614_v28, inf  ;;  %vm1668_vm4 = vcmp.eq.f32.partialorder %v1614_v28, 0.0 }
 0x529   :  { %v1686_v39 = vmul.f32 %v2000_v44, %v1642_v2  ;;  %v1651_v49 = vmul.f32 %v2002_v1, %v3305_v11  ;;  %2009 = vrcp.f32 %v1678_v25 }
 0x52a   :  { %v2004_v27 = vpop.eup %2003 }
 0x52b   :  { %v1701_v5 = vmul.f32 %v1686_v39, %v3253_v56  ;;  %v1702_v4 = vmul.f32 %v1686_v39, %v3255_v42  ;;  %v1653_v59 = vsel %vm1652_vm1, %v3305_v11, %v1651_v49  ;;  %v1757_v56 = vsel %vm1738_vm7, %v1756_v23, %v1752_v38  ;;  %v2006_v35 = vpop.eup %2005 }
 0x52c   :  { %v1656_v15 = vsel %vm1654_vm2, %v1655_v48, %v1653_v59  ;;  %v1770_v42 = vrot.slane %v1703_v10, %v3287_v60  ;;  %v1774_v11 = vrot.slane %v1704_v41, %v3291_v50  ;;  %v1692_v58 = vmul.f32 %v2006_v35, %v1663_v46 }
 0x52d   :  { %v1761_v34 = vrot.slane %v1701_v5, %v3287_v60  ;;  %v1765_v52 = vrot.slane %v1702_v4, %v3291_v50  ;;  %v1690_v29 = vmul.f32 %v2004_v27, %v1656_v15 }
 0x52e   :  { %v1775_v36 = vsel %vm1738_vm7, %v1774_v11, %v1770_v42  ;;  %v1708_v17 = vmul.f32 %v1692_v58, %v3237_v14 }
 0x52f   :  { %v1766_v19 = vsel %vm1738_vm7, %v1765_v52, %v1761_v34  ;;  %v1705_v21 = vmul.f32 %v1690_v29, %v3264_v20  ;;  %v1706_v30 = vmul.f32 %v1690_v29, %v3266_v51  ;;  %v1669_v20 = vand.u32 2147483648, %v1614_v28 }
 0x530   :  { %v1805_v61 = vsel %vm1803_vm10, %v1766_v19, %v1757_v56  ;;  %v1707_v51 = vmul.f32 %v1692_v58, %v3235_v22  ;;  %v1792_v0 = vrot.slane %v1708_v17, %v3291_v50 }
 0x531   :  { %v1779_v62 = vrot.slane %v1705_v21, %v3287_v60  ;;  %v1783_v45 = vrot.slane %v1706_v30, %v3291_v50  ;;  %1814 = vst.msk [vmem:[#allocation7 + $0x2] sm:$0x3] %vm1812_vm12, %v1805_v61  ;;  %v2008_v18 = vpop.eup %2007 }
 0x532   :  { %v1665_v54 = vmul.f32 %v2008_v18, %v1614_v28  ;;  %v1788_v7 = vrot.slane %v1707_v51, %v3287_v60 }
 0x533   :  { %v1784_v16 = vsel %vm1738_vm7, %v1783_v45, %v1779_v62  ;;  %v2010_v8 = vpop.eup %2009 }
 0x534   :  { %v1806_v47 = vsel %vm1803_vm10, %v1784_v16, %v1775_v36  ;;  %v1667_v37 = vsel %vm1666_vm3, %v1614_v28, %v1665_v54  ;;  %v1793_v57 = vsel %vm1738_vm7, %v1792_v0, %v1788_v7 }
 0x535   :  { %1815 = vst.msk [vmem:[#allocation7 + $0x4] sm:$0x3] %vm1812_vm12, %v1806_v47  ;;  %v1670_v24 = vsel %vm1668_vm4, %v1669_v20, %v1667_v37 }
 0x536   :  { %v1694_v13 = vmul.f32 %v2010_v8, %v1670_v24 }
 0x538   :  { %v1709_v32 = vmul.f32 %v1694_v13, %v3275_v26  ;;  %v1710_v55 = vmul.f32 %v1694_v13, %v3277_v63 }
 0x53a   :  { %v1797_v22 = vrot.slane %v1709_v32, %v3287_v60  ;;  %v1801_v14 = vrot.slane %v1710_v55, %v3291_v50 }
 0x53c   :  { %v1802_v12 = vsel %vm1738_vm7, %v1801_v14, %v1797_v22 }
 0x53d   :  { %v1807_v31 = vsel %vm1803_vm10, %v1802_v12, %v1793_v57 }
 0x53e   :  { %1816 = vst.msk [vmem:[#allocation7 + $0x6] sm:$0x3] %vm1812_vm12, %v1807_v31 }
 0x53f   :  { %2066 = shalt.err (!%p2063_p6)
}
 0x540   :  { %s2067_s12 = scalar_lea.hbm %s3392_s2, 128 }
 0x541   :  { %p2068_p7 = scmp.ne.s32.totalorder %s3392_s2, %s2067_s12  ;;  %p2071_p8 = scmp.lt.u32.totalorder %s2067_s12, %s3392_s2 }
 0x543   :  { %p2073_p9 = pnand %p2071_p8, %p2068_p7 }
 0x545   :  { %2076 = shalt.err (!%p2073_p9)
}
 0x546   :  { %1828 = dma.vmem_to_hbm [thread:$0]  %s1823_s8, 128, %s3392_s2, [#allocation4], %s2084_s19, %s2084_s19, %s2085_s20  }
 0x547   :  { %2081 = dma.done.wait [#allocation4], 128  }
 0x548   :  { %2082 = vsyncadd [#allocation4], 4294967168 }
 0x549   :  { %1832 = vsyncpa [#allocation3], 1 }
 0x54a   :  { %1833 = vsyncpa [#allocation6], 1 }
 0x54b   :  { %1834 = vsyncpa [#allocation4], 1 }

</bundles_post_ra>
